<compile_context>
chip_gen: v5e
topology: v5e:2x2
jax: 0.10.0
libtpu: 0.0.40
codegen_flags: <defaults>
</compile_context>

<pallas_src>
import functools
import math

import jax
import jax.numpy as jnp
from jax.experimental import pallas as pl
from jax.experimental.pallas import tpu as pltpu


# ----------------------------------------------------------------------------
# Per-generation hardware config (VMEM budget + tile targets)
# ----------------------------------------------------------------------------

@functools.lru_cache(maxsize=1)
def _hw_config():
    kind = ""
    try:
        kind = jax.devices()[0].device_kind.lower()
    except Exception:
        pass
    vmem_cap = None
    try:
        info = pltpu.get_tpu_info()
        cap = getattr(info, "vmem_capacity_bytes", None)
        if cap:
            vmem_cap = int(cap)
    except Exception:
        vmem_cap = None
    if vmem_cap is None:
        if "v7" in kind or "7x" in kind:
            vmem_cap = 64 * 1024 * 1024
        elif any(g in kind for g in ("v4", "v5", "v6")):
            vmem_cap = 128 * 1024 * 1024
        else:
            vmem_cap = 64 * 1024 * 1024          # conservative fallback
    small_vmem = vmem_cap <= 64 * 1024 * 1024
    return {
        # ~25% headroom below physical VMEM for pipeline buffers / internal scratch.
        "vmem_limit": min(vmem_cap * 3 // 4, 100 * 1024 * 1024),
        # v5e's 128x128 MXU saturates at 128-wide tiles; v6e/v7x (2x256x256) want 256.
        "attn_tile": 128 if "v5" in kind else 256,
        # Matmul / FFN tiling re-derived for v7x's 64 MiB VMEM, wider on 128 MiB parts.
        "mm_n_tile": 256 if small_vmem else 512,
        "mm_k_tile": 256 if small_vmem else 512,
        "ffn_h_tile": 256 if small_vmem else 512,
        "m_tile": 128 if small_vmem else 256,
    }


def _tile(dim, target, align):
    """Largest block <= target that divides dim and is `align`-aligned; else full dim."""
    if dim <= target:
        return dim
    t = (target // align) * align
    while t >= align:
        if dim % t == 0:
            return t
        t -= align
    return dim


# ----------------------------------------------------------------------------
# Fused RMSNorm + matmul (used for the concatenated [Wq|Wk|Wv] projection)
# ----------------------------------------------------------------------------

def _rmsnorm_matmul_kernel(x_ref, g_ref, w_ref, o_ref, *, eps, compute_dtype):
    x = x_ref[...].astype(jnp.float32)
    ms = jnp.mean(x * x, axis=-1, keepdims=True)
    xn = x * jax.lax.rsqrt(ms + eps) * g_ref[...].astype(jnp.float32)
    o_ref[...] = jnp.dot(
        xn.astype(compute_dtype), w_ref[...],                 # weights already bf16
        preferred_element_type=jnp.float32,
    ).astype(o_ref.dtype)


def rmsnorm_matmul(x, g, w, *, eps, compute_dtype):
    """x: (M, K), g: (K,), w: (K, N) [bf16] -> rmsnorm(x) @ w, tiled over (M, N)."""
    M, K = x.shape
    _, N = w.shape
    hw = _hw_config()
    tm = _tile(M, hw["m_tile"], 8)
    tn = _tile(N, hw["mm_n_tile"], 128)
    kernel = functools.partial(_rmsnorm_matmul_kernel, eps=eps,
                               compute_dtype=compute_dtype)
    return pl.pallas_call(
        kernel,
        out_shape=jax.ShapeDtypeStruct((M, N), x.dtype),
        grid=(M // tm, N // tn),
        in_specs=[
            pl.BlockSpec((tm, K), lambda i, j: (i, 0)),   # full K: norm needs whole row
            pl.BlockSpec((1, K), lambda i, j: (0, 0)),
            pl.BlockSpec((K, tn), lambda i, j: (0, j)),
        ],
        out_specs=pl.BlockSpec((tm, tn), lambda i, j: (i, j)),
        compiler_params=pltpu.CompilerParams(
            dimension_semantics=("parallel", "parallel"),
            vmem_limit_bytes=hw["vmem_limit"]),
    )(x, g.reshape(1, K), w)


# ----------------------------------------------------------------------------
# Tiled matmul with K-reduction accumulator and fused residual add (out_proj)
# ----------------------------------------------------------------------------

def _matmul_residual_kernel(x_ref, w_ref, r_ref, o_ref, acc_ref, *, compute_dtype):
    @pl.when(pl.program_id(2) == 0)
    def _():
        acc_ref[...] = jnp.zeros_like(acc_ref)

    acc_ref[...] += jnp.dot(
        x_ref[...].astype(compute_dtype), w_ref[...],
        preferred_element_type=jnp.float32)

    @pl.when(pl.program_id(2) == pl.num_programs(2) - 1)
    def _():
        o_ref[...] = (acc_ref[...] + r_ref[...].astype(jnp.float32)).astype(o_ref.dtype)


def matmul_residual(x, w, res, *, compute_dtype):
    """(x @ w) + res.  x: (M, K), w: (K, N) [bf16], res: (M, N)."""
    M, K = x.shape
    _, N = w.shape
    hw = _hw_config()
    tm = _tile(M, hw["m_tile"], 8)
    tn = _tile(N, hw["mm_n_tile"], 128)
    tk = _tile(K, hw["mm_k_tile"], 128)
    kernel = functools.partial(_matmul_residual_kernel, compute_dtype=compute_dtype)
    return pl.pallas_call(
        kernel,
        out_shape=jax.ShapeDtypeStruct((M, N), res.dtype),
        grid=(M // tm, N // tn, K // tk),
        in_specs=[
            pl.BlockSpec((tm, tk), lambda i, j, k: (i, k)),
            pl.BlockSpec((tk, tn), lambda i, j, k: (k, j)),
            pl.BlockSpec((tm, tn), lambda i, j, k: (i, j)),
        ],
        out_specs=pl.BlockSpec((tm, tn), lambda i, j, k: (i, j)),
        scratch_shapes=[pltpu.VMEM((tm, tn), jnp.float32)],
        compiler_params=pltpu.CompilerParams(
            dimension_semantics=("parallel", "parallel", "arbitrary"),
            vmem_limit_bytes=hw["vmem_limit"]),
    )(x, w, res)


# ----------------------------------------------------------------------------
# Fused RMSNorm + SwiGLU FFN + residual, tiled over (M rows, hidden-dim chunks)
# ----------------------------------------------------------------------------

def _rmsnorm_ffn_kernel(x_ref, g_ref, w1_ref, w2_ref, w3_ref, o_ref,
                        xn_ref, acc_ref, *, eps, sub, compute_dtype):
    h = pl.program_id(1)

    @pl.when(h == 0)
    def _():
        x = x_ref[...].astype(jnp.float32)
        ms = jnp.mean(x * x, axis=-1, keepdims=True)
        xn = x * jax.lax.rsqrt(ms + eps) * g_ref[...].astype(jnp.float32)
        xn_ref[...] = xn.astype(compute_dtype)     # normalize the row tile once
        acc_ref[...] = jnp.zeros_like(acc_ref)

    xn = xn_ref[...]
    th = w1_ref.shape[1]
    n_sub = th // sub

    # Sub-chunk the hidden dim so the (tm, sub) f32 SwiGLU intermediates stay
    # vreg-friendly instead of living as big spilled VMEM temporaries.
    @pl.loop(0, n_sub, unroll=True)
    def _(s):
        off = pl.multiple_of(s * sub, sub)
        a = jnp.dot(xn, w1_ref[:, pl.ds(off, sub)], preferred_element_type=jnp.float32)
        b = jnp.dot(xn, w2_ref[:, pl.ds(off, sub)], preferred_element_type=jnp.float32)
        hact = (a * jax.nn.sigmoid(a)) * b          # silu(fc1(x)) * fc2(x)
        acc_ref[...] += jnp.dot(hact.astype(compute_dtype), w3_ref[pl.ds(off, sub), :],
                                preferred_element_type=jnp.float32)

    @pl.when(h == pl.num_programs(1) - 1)
    def _():
        # residual is the FFN input itself (pre-norm), so reuse x_ref
        o_ref[...] = (acc_ref[...] + x_ref[...].astype(jnp.float32)).astype(o_ref.dtype)


def rmsnorm_ffn(x, g, w1, w2, w3, *, eps, compute_dtype):
    """fc3(silu(fc1(norm(x))) * fc2(norm(x))) + x.  w1,w2: (E, H); w3: (H, E) [bf16]."""
    M, E = x.shape
    _, H = w1.shape
    hw = _hw_config()
    tm = _tile(M, hw["m_tile"], 8)
    th = _tile(H, hw["ffn_h_tile"], 128)
    sub = 256 if (th > 256 and th % 256 == 0) else th
    kernel = functools.partial(_rmsnorm_ffn_kernel, eps=eps, sub=sub,
                               compute_dtype=compute_dtype)
    return pl.pallas_call(
        kernel,
        out_shape=jax.ShapeDtypeStruct((M, E), x.dtype),
        grid=(M // tm, H // th),
        in_specs=[
            pl.BlockSpec((tm, E), lambda i, h: (i, 0)),
            pl.BlockSpec((1, E), lambda i, h: (0, 0)),
            pl.BlockSpec((E, th), lambda i, h: (0, h)),
            pl.BlockSpec((E, th), lambda i, h: (0, h)),
            pl.BlockSpec((th, E), lambda i, h: (h, 0)),
        ],
        out_specs=pl.BlockSpec((tm, E), lambda i, h: (i, 0)),
        scratch_shapes=[pltpu.VMEM((tm, E), compute_dtype),
                        pltpu.VMEM((tm, E), jnp.float32)],
        compiler_params=pltpu.CompilerParams(
            dimension_semantics=("parallel", "arbitrary"),
            vmem_limit_bytes=hw["vmem_limit"]),
    )(x, g.reshape(1, E), w1, w2, w3)


# ----------------------------------------------------------------------------
# Flash-style grouped-query causal attention with fused RoPE.
# Grid (B, kv_groups, Sq, Skv): each grid point handles ALL group_size query
# heads of one KV group, so each K/V tile is DMA'd once per group (not per head).
# ----------------------------------------------------------------------------

def _flash_attn_kernel(q_ref, k_ref, v_ref, cq_ref, sq_ref, ck_ref, sk_ref,
                       o_ref, qrot_ref, m_ref, l_ref, acc_ref,
                       *, scale, compute_dtype):
    qi = pl.program_id(2)
    ki = pl.program_id(3)
    gsz, tq, D = o_ref.shape
    tk = k_ref.shape[0]

    @pl.when(ki == 0)
    def _():
        # RoPE + 1/sqrt(D) softmax scale folded into q, once per (batch, group, q tile).
        q = q_ref[...].astype(jnp.float32)                       # (gsz, tq, D)
        q1 = q[..., : D // 2]
        q2 = q[..., D // 2:]
        qrot = jnp.concatenate([-q2, q1], axis=-1)
        cos = cq_ref[...][None, :, :]
        sin = sq_ref[...][None, :, :]
        qr = (q * cos + qrot * sin) * scale
        qrot_ref[...] = qr.reshape(gsz * tq, D).astype(compute_dtype)
        m_ref[...] = jnp.full_like(m_ref, -1e30)
        l_ref[...] = jnp.zeros_like(l_ref)
        acc_ref[...] = jnp.zeros_like(acc_ref)

    # Causal tile skip. The k/v (and cos/sin-for-k) index_maps clamp the block
    # index to min(j, i), so fully-masked tiles also skip the HBM DMA.
    @pl.when(ki <= qi)
    def _():
        k = k_ref[...].astype(jnp.float32)                       # (tk, D)
        k1 = k[:, : D // 2]
        k2 = k[:, D // 2:]
        krot = jnp.concatenate([-k2, k1], axis=-1)
        k = (k * ck_ref[...] + krot * sk_ref[...]).astype(compute_dtype)

        q = qrot_ref[...]                                        # (gsz*tq, D), pre-scaled
        # q @ k^T as a last-dim contraction (no k.T copy)
        s = jax.lax.dot_general(q, k, (((1,), (1,)), ((), ())),
                                preferred_element_type=jnp.float32)  # (gsz*tq, tk)

        row = qi * tq + jax.lax.broadcasted_iota(jnp.int32, (gsz, tq, tk), 1)
        col = ki * tk + jax.lax.broadcasted_iota(jnp.int32, (gsz, tq, tk), 2)
        mask = (row >= col).reshape(gsz * tq, tk)
        s = jnp.where(mask, s, -1e30)                            # causal mask

        m_prev = m_ref[...]
        m_new = jnp.maximum(m_prev, jnp.max(s, axis=-1, keepdims=True))
        alpha = jnp.exp(m_prev - m_new)
        p = jnp.exp(s - m_new)
        l_ref[...] = alpha * l_ref[...] + jnp.sum(p, axis=-1, keepdims=True)
        acc_ref[...] = alpha * acc_ref[...] + jnp.dot(
            p.astype(compute_dtype), v_ref[...].astype(compute_dtype),
            preferred_element_type=jnp.float32)
        m_ref[...] = m_new

    @pl.when(ki == pl.num_programs(3) - 1)
    def _():
        out = acc_ref[...] * pl.reciprocal(l_ref[...], approx=True)
        o_ref[...] = out.reshape(gsz, tq, D).astype(o_ref.dtype)


def flash_attention(q, k, v, cos, sin, group_size, *, compute_dtype):
    """q: (B, H, S, D); k, v: (B, G, S, D); cos/sin: (S, D) -> (B, H, S, D), causal GQA."""
    B, H, S, D = q.shape
    G = k.shape[1]
    hw = _hw_config()
    t = _tile(S, hw["attn_tile"], 8)                 # same tile for q and kv axes
    scale = 1.0 / math.sqrt(D)
    kernel = functools.partial(_flash_attn_kernel, scale=scale,
                               compute_dtype=compute_dtype)
    nt = S // t
    return pl.pallas_call(
        kernel,
        out_shape=jax.ShapeDtypeStruct((B, H, S, D), q.dtype),
        grid=(B, G, nt, nt),
        in_specs=[
            pl.BlockSpec((None, group_size, t, D), lambda b, g, i, j: (b, g, i, 0)),
            pl.BlockSpec((None, None, t, D),
                         lambda b, g, i, j: (b, g, jnp.minimum(j, i), 0)),
            pl.BlockSpec((None, None, t, D),
                         lambda b, g, i, j: (b, g, jnp.minimum(j, i), 0)),
            pl.BlockSpec((t, D), lambda b, g, i, j: (i, 0)),                  # cos for q
            pl.BlockSpec((t, D), lambda b, g, i, j: (i, 0)),                  # sin for q
            pl.BlockSpec((t, D), lambda b, g, i, j: (jnp.minimum(j, i), 0)),  # cos for k
            pl.BlockSpec((t, D), lambda b, g, i, j: (jnp.minimum(j, i), 0)),  # sin for k
        ],
        out_specs=pl.BlockSpec((None, group_size, t, D), lambda b, g, i, j: (b, g, i, 0)),
        scratch_shapes=[
            pltpu.VMEM((group_size * t, D), compute_dtype),   # RoPE'd + scaled q
            pltpu.VMEM((group_size * t, 1), jnp.float32),     # running max
            pltpu.VMEM((group_size * t, 1), jnp.float32),     # running denom
            pltpu.VMEM((group_size * t, D), jnp.float32),     # output accumulator
        ],
        compiler_params=pltpu.CompilerParams(
            dimension_semantics=("parallel", "parallel", "parallel", "arbitrary"),
            vmem_limit_bytes=hw["vmem_limit"]),
    )(q, k, v, cos, sin, cos, sin)


# ----------------------------------------------------------------------------
# RoPE table precompute (init-time glue, mirrors compute_rope_params)
# ----------------------------------------------------------------------------

def compute_rope_params(head_dim, theta_base=10000.0, context_length=4096):
    assert head_dim % 2 == 0
    inv_freq = 1.0 / theta_base ** (
        jnp.arange(0, head_dim, 2, dtype=jnp.float32) / head_dim)
    positions = jnp.arange(context_length, dtype=jnp.float32)
    angles = positions[:, None] * inv_freq[None, :]
    angles = jnp.concatenate([angles, angles], axis=1)
    return jnp.cos(angles), jnp.sin(angles)


# ----------------------------------------------------------------------------
# TransformerBlockFast: parameters + forward
# ----------------------------------------------------------------------------

def init_block_params(key, cfg):
    E, Hd = cfg["emb_dim"], cfg["hidden_dim"]
    nh, nkv = cfg["n_heads"], cfg["n_kv_groups"]
    hd = E // nh
    wdt = cfg["compute_dtype"]   # weights stored bf16 in HBM: halves weight DMA + VMEM
    # TODO(synk): on v7x consider fp8 weight storage + per-channel scales for a further
    # 2x MXU / DMA win (fp8 is the v7x MXU narrow dtype; int8 is not supported there).

    def dense(k, shape):
        return (0.02 * jax.random.normal(k, shape, dtype=jnp.float32)).astype(wdt)

    ks = jax.random.split(key, 5)
    return {
        # Linear weights stored pre-transposed: (in_features, out_features).
        "wqkv_t": dense(ks[0], (E, (nh + 2 * nkv) * hd)),   # [Wq | Wk | Wv] fused
        "wo_t": dense(ks[1], (E, E)),
        "w1_t": dense(ks[2], (E, Hd)),
        "w2_t": dense(ks[3], (E, Hd)),
        "w3_t": dense(ks[4], (Hd, E)),
        "norm1": jnp.ones((E,), dtype=jnp.float32),
        "norm2": jnp.ones((E,), dtype=jnp.float32),
    }


def transformer_block(p, x, cos, sin, cfg):
    B, S, E = x.shape
    nh, nkv = cfg["n_heads"], cfg["n_kv_groups"]
    hd = E // nh
    group_size = nh // nkv
    eps = 1e-5
    cdt = cfg["compute_dtype"]
    M = B * S
    x2d = x.reshape(M, E)

    # --- attention sub-block ---
    # fused RMSNorm + [Wq|Wk|Wv] projection (activation read & normalized once)
    qkv = rmsnorm_matmul(x2d, p["norm1"], p["wqkv_t"], eps=eps, compute_dtype=cdt)
    q = qkv[:, : nh * hd].reshape(B, S, nh, hd).transpose(0, 2, 1, 3)
    k = qkv[:, nh * hd:(nh + nkv) * hd].reshape(B, S, nkv, hd).transpose(0, 2, 1, 3)
    v = qkv[:, (nh + nkv) * hd:].reshape(B, S, nkv, hd).transpose(0, 2, 1, 3)
    # TODO(synk): when head_dim % 128 == 0, feed q/k/v straight from the (M, qkv_dim)
    # buffer via BlockSpec index_maps (head -> column block) and write the attention
    # output into an (M, E) lane-dense buffer to drop these XLA transposes entirely
    # (toy head_dim=16 keeps the robust reshape/transpose path).

    cos_s = cos[:S].astype(jnp.float32)
    sin_s = sin[:S].astype(jnp.float32)

    # flash attention with fused RoPE, per-KV-group query-head batching, causal DMA clamp
    attn = flash_attention(q, k, v, cos_s, sin_s, group_size, compute_dtype=cdt)
    attn2d = attn.transpose(0, 2, 1, 3).reshape(M, E)

    # output projection with fused residual add (+ original pre-norm x)
    x_attn = matmul_residual(attn2d, p["wo_t"], x2d, compute_dtype=cdt)

    # --- feed-forward sub-block (RMSNorm + SwiGLU + residual fused, H-tiled) ---
    out2d = rmsnorm_ffn(x_attn, p["norm2"], p["w1_t"], p["w2_t"], p["w3_t"],
                        eps=eps, compute_dtype=cdt)
    return out2d.reshape(B, S, E)


# ----------------------------------------------------------------------------
# Main
# ----------------------------------------------------------------------------

if __name__ == "__main__":
    cfg = {
        "emb_dim": 64,
        "n_heads": 4,
        "n_kv_groups": 2,
        "hidden_dim": 128,
        "context_length": 64,
        "rope_base": 10000.0,
        "dtype": jnp.float32,           # activation storage dtype
        "compute_dtype": jnp.bfloat16,  # weight storage / MXU feed dtype (f32 accumulation)
    }
    B, S = 2, 8

    key = jax.random.PRNGKey(0)
    pkey, xkey = jax.random.split(key)
    params = init_block_params(pkey, cfg)
    cos, sin = compute_rope_params(
        head_dim=cfg["emb_dim"] // cfg["n_heads"],
        theta_base=cfg["rope_base"],
        context_length=cfg["context_length"],
    )
    x = jax.random.normal(xkey, (B, S, cfg["emb_dim"]), dtype=cfg["dtype"])

    fwd = jax.jit(lambda p, xx, c, s: transformer_block(p, xx, c, s, cfg))
    y = fwd(params, x, cos, sin)
    jax.block_until_ready(y)

    assert y.shape == (B, S, cfg["emb_dim"])
    assert bool(jnp.all(jnp.isfinite(y)))
    print("KERNEL_OK")
</pallas_src>

<mosaic_0001>
module attributes {stable_mosaic.version = 11 : i64} {
  func.func @_rmsnorm_matmul_kernel(%arg0: i32, %arg1: i32, %arg2: memref<16x64xf32, #tpu.memory_space<vmem>>, %arg3: memref<1x64xf32, #tpu.memory_space<vmem>>, %arg4: memref<64x128xbf16, #tpu.memory_space<vmem>>, %arg5: memref<16x128xf32, #tpu.memory_space<vmem>>) attributes {dimension_semantics = [#tpu.dimension_semantics<parallel>, #tpu.dimension_semantics<parallel>], iteration_bounds = array<i64: 1, 1>, scalar_prefetch = 0 : i64, scratch_operands = 0 : i64, tpu.core_type = #tpu.core_type<tc>, window_params = [{transform_indices = @transform_0, window_bounds = array<i64: 16, 64>}, {pipeline_mode = #tpu.pipeline_mode<synchronous>, transform_indices = @transform_1, window_bounds = array<i64: 1, 64>}, {transform_indices = @transform_2, window_bounds = array<i64: 64, 128>}, {transform_indices = @transform_3, window_bounds = array<i64: 16, 128>}]} {
    %c0 = arith.constant 0 : index
    %c0_0 = arith.constant 0 : index
    %0 = vector.load %arg2[%c0, %c0_0] : memref<16x64xf32, #tpu.memory_space<vmem>>, vector<16x64xf32>
    %1 = arith.mulf %0, %0 : vector<16x64xf32>
    %cst = arith.constant dense<0.000000e+00> : vector<16xf32>
    %2 = vector.multi_reduction <add>, %1, %cst [1] : vector<16x64xf32> to vector<16xf32>
    %3 = vector.shape_cast %2 : vector<16xf32> to vector<16x1xf32>
    %cst_1 = arith.constant 6.400000e+01 : f32
    %4 = vector.broadcast %cst_1 : f32 to vector<16x1xf32>
    %5 = arith.divf %3, %4 : vector<16x1xf32>
    %cst_2 = arith.constant 9.99999974E-6 : f32
    %6 = vector.broadcast %cst_2 : f32 to vector<16x1xf32>
    %7 = arith.addf %5, %6 : vector<16x1xf32>
    %8 = math.rsqrt %7 : vector<16x1xf32>
    %9 = vector.broadcast %8 : vector<16x1xf32> to vector<16x64xf32>
    %10 = arith.mulf %0, %9 : vector<16x64xf32>
    %c0_3 = arith.constant 0 : index
    %c0_4 = arith.constant 0 : index
    %11 = vector.load %arg3[%c0_3, %c0_4] : memref<1x64xf32, #tpu.memory_space<vmem>>, vector<1x64xf32>
    %12 = vector.broadcast %11 : vector<1x64xf32> to vector<16x64xf32>
    %13 = arith.mulf %10, %12 : vector<16x64xf32>
    %14 = arith.truncf %13 : vector<16x64xf32> to vector<16x64xbf16>
    %c0_5 = arith.constant 0 : index
    %c0_6 = arith.constant 0 : index
    %15 = vector.load %arg4[%c0_5, %c0_6] : memref<64x128xbf16, #tpu.memory_space<vmem>>, vector<64x128xbf16>
    %cst_7 = arith.constant dense<0.000000e+00> : vector<16x128xf32>
    %16 = tpu.matmul %14, %15, %cst_7 {dimension_numbers = #tpu.dot_dimension_numbers<[1], [0], [0], [1], [0, 0, 1, 1], [], []>} : vector<16x64xbf16>, vector<64x128xbf16>, vector<16x128xf32> -> vector<16x128xf32>
    %c0_8 = arith.constant 0 : index
    %c0_9 = arith.constant 0 : index
    %17 = vector.load %arg5[%c0_8, %c0_9] : memref<16x128xf32, #tpu.memory_space<vmem>>, vector<16x128xf32>
    tpu.vector_store %arg5[%c0_8, %c0_9], %16 {strides = array<i32>} : memref<16x128xf32, #tpu.memory_space<vmem>>, vector<16x128xf32>,
    return
  }
  func.func @transform_0(%arg0: i32, %arg1: i32) -> (i32, i32) {
    %c0_i32 = arith.constant 0 : i32
    %c0_i32_0 = arith.constant 0 : i32
    return %arg0, %c0_i32 : i32, i32
  }
  func.func @transform_1(%arg0: i32, %arg1: i32) -> (i32, i32) {
    %c0_i32 = arith.constant 0 : i32
    %c0_i32_0 = arith.constant 0 : i32
    %c0_i32_1 = arith.constant 0 : i32
    return %c0_i32, %c0_i32_0 : i32, i32
  }
  func.func @transform_2(%arg0: i32, %arg1: i32) -> (i32, i32) {
    %c0_i32 = arith.constant 0 : i32
    %c0_i32_0 = arith.constant 0 : i32
    return %c0_i32, %arg1 : i32, i32
  }
  func.func @transform_3(%arg0: i32, %arg1: i32) -> (i32, i32) {
    %c0_i32 = arith.constant 0 : i32
    return %arg0, %arg1 : i32, i32
  }
}

module attributes {stable_mosaic.version = 11 : i64} {
  func.func @_flash_attn_kernel(%arg0: i32, %arg1: i32, %arg2: i32, %arg3: i32, %arg4: memref<1x2x8x16xf32, #tpu.memory_space<vmem>>, %arg5: memref<1x1x8x16xf32, #tpu.memory_space<vmem>>, %arg6: memref<1x1x8x16xf32, #tpu.memory_space<vmem>>, %arg7: memref<8x16xf32, #tpu.memory_space<vmem>>, %arg8: memref<8x16xf32, #tpu.memory_space<vmem>>, %arg9: memref<8x16xf32, #tpu.memory_space<vmem>>, %arg10: memref<8x16xf32, #tpu.memory_space<vmem>>, %arg11: memref<1x2x8x16xf32, #tpu.memory_space<vmem>>, %arg12: memref<16x16xbf16, #tpu.memory_space<vmem>>, %arg13: memref<16x1xf32, #tpu.memory_space<vmem>>, %arg14: memref<16x1xf32, #tpu.memory_space<vmem>>, %arg15: memref<16x16xf32, #tpu.memory_space<vmem>>) attributes {dimension_semantics = [#tpu.dimension_semantics<parallel>, #tpu.dimension_semantics<parallel>, #tpu.dimension_semantics<parallel>, #tpu.dimension_semantics<arbitrary>], iteration_bounds = array<i64: 2, 2, 1, 1>, scalar_prefetch = 0 : i64, scratch_operands = 4 : i64, tpu.core_type = #tpu.core_type<tc>, window_params = [{transform_indices = @transform_0, window_bounds = array<i64: 1, 2, 8, 16>}, {transform_indices = @transform_1, window_bounds = array<i64: 1, 1, 8, 16>}, {transform_indices = @transform_2, window_bounds = array<i64: 1, 1, 8, 16>}, {transform_indices = @transform_3, window_bounds = array<i64: 8, 16>}, {transform_indices = @transform_4, window_bounds = array<i64: 8, 16>}, {transform_indices = @transform_5, window_bounds = array<i64: 8, 16>}, {transform_indices = @transform_6, window_bounds = array<i64: 8, 16>}, {transform_indices = @transform_7, window_bounds = array<i64: 1, 2, 8, 16>}]} {
    %c0_i32 = arith.constant 0 : i32
    %0 = arith.cmpi eq, %arg3, %c0_i32 : i32
    %1 = arith.extui %0 : i1 to i32
    %c0_i32_0 = arith.constant 0 : i32
    %2 = arith.cmpi ne, %1, %c0_i32_0 : i32
    scf.if %2 {
      %c0 = arith.constant 0 : index
      %c0_4 = arith.constant 0 : index
      %c0_5 = arith.constant 0 : index
      %c0_6 = arith.constant 0 : index
      %9 = vector.load %arg4[%c0, %c0_4, %c0_5, %c0_6] : memref<1x2x8x16xf32, #tpu.memory_space<vmem>>, vector<1x2x8x16xf32>
      %10 = vector.shape_cast %9 : vector<1x2x8x16xf32> to vector<2x8x16xf32>
      %11 = vector.extract_strided_slice %10 {offsets = [0, 0, 0], sizes = [2, 8, 8], strides = [1, 1, 1]} : vector<2x8x16xf32> to vector<2x8x8xf32>
      %12 = vector.extract_strided_slice %10 {offsets = [0, 0, 8], sizes = [2, 8, 8], strides = [1, 1, 1]} : vector<2x8x16xf32> to vector<2x8x8xf32>
      %cst = arith.constant 0.000000e+00 : f32
      %13 = vector.broadcast %cst : f32 to vector<2x8x8xf32>
      %14 = arith.subf %13, %12 : vector<2x8x8xf32>
      %15 = tpu.concatenate %14, %11 in 2 : vector<2x8x8xf32>, vector<2x8x8xf32> -> vector<2x8x16xf32>
      %c0_7 = arith.constant 0 : index
      %c0_8 = arith.constant 0 : index
      %16 = vector.load %arg7[%c0_7, %c0_8] : memref<8x16xf32, #tpu.memory_space<vmem>>, vector<8x16xf32>
      %17 = vector.shape_cast %16 : vector<8x16xf32> to vector<1x8x16xf32>
      %c0_9 = arith.constant 0 : index
      %c0_10 = arith.constant 0 : index
      %18 = vector.load %arg8[%c0_9, %c0_10] : memref<8x16xf32, #tpu.memory_space<vmem>>, vector<8x16xf32>
      %19 = vector.shape_cast %18 : vector<8x16xf32> to vector<1x8x16xf32>
      %20 = vector.broadcast %17 : vector<1x8x16xf32> to vector<2x8x16xf32>
      %21 = arith.mulf %10, %20 : vector<2x8x16xf32>
      %22 = vector.broadcast %19 : vector<1x8x16xf32> to vector<2x8x16xf32>
      %23 = arith.mulf %15, %22 : vector<2x8x16xf32>
      %24 = arith.addf %21, %23 : vector<2x8x16xf32>
      %cst_11 = arith.constant 2.500000e-01 : f32
      %25 = vector.broadcast %cst_11 : f32 to vector<2x8x16xf32>
      %26 = arith.mulf %24, %25 : vector<2x8x16xf32>
      %27 = vector.shape_cast %26 : vector<2x8x16xf32> to vector<16x16xf32>
      %28 = arith.truncf %27 : vector<16x16xf32> to vector<16x16xbf16>
      %c0_12 = arith.constant 0 : index
      %c0_13 = arith.constant 0 : index
      %29 = vector.load %arg12[%c0_12, %c0_13] : memref<16x16xbf16, #tpu.memory_space<vmem>>, vector<16x16xbf16>
      tpu.vector_store %arg12[%c0_12, %c0_13], %28 {strides = array<i32>} : memref<16x16xbf16, #tpu.memory_space<vmem>>, vector<16x16xbf16>,
      %cst_14 = arith.constant -1.000000e+30 : f32
      %30 = vector.broadcast %cst_14 : f32 to vector<16x1xf32>
      %c0_15 = arith.constant 0 : index
      %c0_16 = arith.constant 0 : index
      %31 = vector.load %arg13[%c0_15, %c0_16] : memref<16x1xf32, #tpu.memory_space<vmem>>, vector<16x1xf32>
      tpu.vector_store %arg13[%c0_15, %c0_16], %30 {strides = array<i32>} : memref<16x1xf32, #tpu.memory_space<vmem>>, vector<16x1xf32>,
      %cst_17 = arith.constant 0.000000e+00 : f32
      %32 = vector.broadcast %cst_17 : f32 to vector<16x1xf32>
      %c0_18 = arith.constant 0 : index
      %c0_19 = arith.constant 0 : index
      %33 = vector.load %arg14[%c0_18, %c0_19] : memref<16x1xf32, #tpu.memory_space<vmem>>, vector<16x1xf32>
      tpu.vector_store %arg14[%c0_18, %c0_19], %32 {strides = array<i32>} : memref<16x1xf32, #tpu.memory_space<vmem>>, vector<16x1xf32>,
      %cst_20 = arith.constant 0.000000e+00 : f32
      %34 = vector.broadcast %cst_20 : f32 to vector<16x16xf32>
      %c0_21 = arith.constant 0 : index
      %c0_22 = arith.constant 0 : index
      %35 = vector.load %arg15[%c0_21, %c0_22] : memref<16x16xf32, #tpu.memory_space<vmem>>, vector<16x16xf32>
      tpu.vector_store %arg15[%c0_21, %c0_22], %34 {strides = array<i32>} : memref<16x16xf32, #tpu.memory_space<vmem>>, vector<16x16xf32>,
    } else {
    }
    %3 = arith.cmpi sle, %arg3, %arg2 : i32
    %4 = arith.extui %3 : i1 to i32
    %c0_i32_1 = arith.constant 0 : i32
    %5 = arith.cmpi ne, %4, %c0_i32_1 : i32
    scf.if %5 {
      %c0 = arith.constant 0 : index
      %c0_4 = arith.constant 0 : index
      %c0_5 = arith.constant 0 : index
      %c0_6 = arith.constant 0 : index
      %9 = vector.load %arg5[%c0, %c0_4, %c0_5, %c0_6] : memref<1x1x8x16xf32, #tpu.memory_space<vmem>>, vector<1x1x8x16xf32>
      %10 = vector.shape_cast %9 : vector<1x1x8x16xf32> to vector<8x16xf32>
      %11 = vector.extract_strided_slice %10 {offsets = [0, 0], sizes = [8, 8], strides = [1, 1]} : vector<8x16xf32> to vector<8x8xf32>
      %12 = vector.extract_strided_slice %10 {offsets = [0, 8], sizes = [8, 8], strides = [1, 1]} : vector<8x16xf32> to vector<8x8xf32>
      %cst = arith.constant 0.000000e+00 : f32
      %13 = vector.broadcast %cst : f32 to vector<8x8xf32>
      %14 = arith.subf %13, %12 : vector<8x8xf32>
      %15 = tpu.concatenate %14, %11 in 1 : vector<8x8xf32>, vector<8x8xf32> -> vector<8x16xf32>
      %c0_7 = arith.constant 0 : index
      %c0_8 = arith.constant 0 : index
      %16 = vector.load %arg9[%c0_7, %c0_8] : memref<8x16xf32, #tpu.memory_space<vmem>>, vector<8x16xf32>
      %17 = arith.mulf %10, %16 : vector<8x16xf32>
      %c0_9 = arith.constant 0 : index
      %c0_10 = arith.constant 0 : index
      %18 = vector.load %arg10[%c0_9, %c0_10] : memref<8x16xf32, #tpu.memory_space<vmem>>, vector<8x16xf32>
      %19 = arith.mulf %15, %18 : vector<8x16xf32>
      %20 = arith.addf %17, %19 : vector<8x16xf32>
      %21 = arith.truncf %20 : vector<8x16xf32> to vector<8x16xbf16>
      %c0_11 = arith.constant 0 : index
      %c0_12 = arith.constant 0 : index
      %22 = vector.load %arg12[%c0_11, %c0_12] : memref<16x16xbf16, #tpu.memory_space<vmem>>, vector<16x16xbf16>
      %cst_13 = arith.constant dense<0.000000e+00> : vector<16x8xf32>
      %23 = tpu.matmul %22, %21, %cst_13 {dimension_numbers = #tpu.dot_dimension_numbers<[1], [1], [0], [0], [0, 0, 1, 0], [], []>} : vector<16x16xbf16>, vector<8x16xbf16>, vector<16x8xf32> -> vector<16x8xf32>
      %c8_i32 = arith.constant 8 : i32
      %24 = arith.muli %arg2, %c8_i32 : i32
      %25 = tpu.iota {dimensions = array<i32: 1>} : vector<2x8x8xi32>
      %26 = vector.broadcast %24 : i32 to vector<2x8x8xi32>
      %27 = arith.addi %26, %25 : vector<2x8x8xi32>
      %c8_i32_14 = arith.constant 8 : i32
      %28 = arith.muli %arg3, %c8_i32_14 : i32
      %29 = tpu.iota {dimensions = array<i32: 2>} : vector<2x8x8xi32>
      %30 = vector.broadcast %28 : i32 to vector<2x8x8xi32>
      %31 = arith.addi %30, %29 : vector<2x8x8xi32>
      %32 = arith.cmpi sge, %27, %31 : vector<2x8x8xi32>
      %33 = vector.shape_cast %32 : vector<2x8x8xi1> to vector<16x8xi1>
      %cst_15 = arith.constant -1.000000e+30 : f32
      %34 = vector.broadcast %cst_15 : f32 to vector<16x8xf32>
      %35 = arith.select %33, %23, %34 : vector<16x8xi1>, vector<16x8xf32>
      %c0_16 = arith.constant 0 : index
      %c0_17 = arith.constant 0 : index
      %36 = vector.load %arg13[%c0_16, %c0_17] : memref<16x1xf32, #tpu.memory_space<vmem>>, vector<16x1xf32>
      %cst_18 = arith.constant dense<0xFF800000> : vector<16xf32>
      %37 = vector.multi_reduction <maximumf>, %35, %cst_18 [1] : vector<16x8xf32> to vector<16xf32>
      %38 = vector.shape_cast %37 : vector<16xf32> to vector<16x1xf32>
      %39 = arith.maximumf %36, %38 : vector<16x1xf32>
      %40 = arith.subf %36, %39 : vector<16x1xf32>
      %41 = math.exp %40 : vector<16x1xf32>
      %42 = vector.broadcast %39 : vector<16x1xf32> to vector<16x8xf32>
      %43 = arith.subf %35, %42 : vector<16x8xf32>
      %44 = math.exp %43 : vector<16x8xf32>
      %c0_19 = arith.constant 0 : index
      %c0_20 = arith.constant 0 : index
      %45 = vector.load %arg14[%c0_19, %c0_20] : memref<16x1xf32, #tpu.memory_space<vmem>>, vector<16x1xf32>
      %46 = arith.mulf %41, %45 : vector<16x1xf32>
      %cst_21 = arith.constant dense<0.000000e+00> : vector<16xf32>
      %47 = vector.multi_reduction <add>, %44, %cst_21 [1] : vector<16x8xf32> to vector<16xf32>
      %48 = vector.shape_cast %47 : vector<16xf32> to vector<16x1xf32>
      %49 = arith.addf %46, %48 : vector<16x1xf32>
      %c0_22 = arith.constant 0 : index
      %c0_23 = arith.constant 0 : index
      %50 = vector.load %arg14[%c0_22, %c0_23] : memref<16x1xf32, #tpu.memory_space<vmem>>, vector<16x1xf32>
      tpu.vector_store %arg14[%c0_22, %c0_23], %49 {strides = array<i32>} : memref<16x1xf32, #tpu.memory_space<vmem>>, vector<16x1xf32>,
      %c0_24 = arith.constant 0 : index
      %c0_25 = arith.constant 0 : index
      %51 = vector.load %arg15[%c0_24, %c0_25] : memref<16x16xf32, #tpu.memory_space<vmem>>, vector<16x16xf32>
      %52 = vector.broadcast %41 : vector<16x1xf32> to vector<16x16xf32>
      %53 = arith.mulf %52, %51 : vector<16x16xf32>
      %54 = arith.truncf %44 : vector<16x8xf32> to vector<16x8xbf16>
      %c0_26 = arith.constant 0 : index
      %c0_27 = arith.constant 0 : index
      %c0_28 = arith.constant 0 : index
      %c0_29 = arith.constant 0 : index
      %55 = vector.load %arg6[%c0_26, %c0_27, %c0_28, %c0_29] : memref<1x1x8x16xf32, #tpu.memory_space<vmem>>, vector<1x1x8x16xf32>
      %56 = vector.shape_cast %55 : vector<1x1x8x16xf32> to vector<8x16xf32>
      %57 = arith.truncf %56 : vector<8x16xf32> to vector<8x16xbf16>
      %cst_30 = arith.constant dense<0.000000e+00> : vector<16x16xf32>
      %58 = tpu.matmul %54, %57, %cst_30 {dimension_numbers = #tpu.dot_dimension_numbers<[1], [0], [0], [1], [0, 0, 1, 1], [], []>} : vector<16x8xbf16>, vector<8x16xbf16>, vector<16x16xf32> -> vector<16x16xf32>
      %59 = arith.addf %53, %58 : vector<16x16xf32>
      %c0_31 = arith.constant 0 : index
      %c0_32 = arith.constant 0 : index
      %60 = vector.load %arg15[%c0_31, %c0_32] : memref<16x16xf32, #tpu.memory_space<vmem>>, vector<16x16xf32>
      tpu.vector_store %arg15[%c0_31, %c0_32], %59 {strides = array<i32>} : memref<16x16xf32, #tpu.memory_space<vmem>>, vector<16x16xf32>,
      %c0_33 = arith.constant 0 : index
      %c0_34 = arith.constant 0 : index
      %61 = vector.load %arg13[%c0_33, %c0_34] : memref<16x1xf32, #tpu.memory_space<vmem>>, vector<16x1xf32>
      tpu.vector_store %arg13[%c0_33, %c0_34], %39 {strides = array<i32>} : memref<16x1xf32, #tpu.memory_space<vmem>>, vector<16x1xf32>,
    } else {
    }
    %c0_i32_2 = arith.constant 0 : i32
    %6 = arith.cmpi eq, %arg3, %c0_i32_2 : i32
    %7 = arith.extui %6 : i1 to i32
    %c0_i32_3 = arith.constant 0 : i32
    %8 = arith.cmpi ne, %7, %c0_i32_3 : i32
    scf.if %8 {
      %c0 = arith.constant 0 : index
      %c0_4 = arith.constant 0 : index
      %9 = vector.load %arg15[%c0, %c0_4] : memref<16x16xf32, #tpu.memory_space<vmem>>, vector<16x16xf32>
      %c0_5 = arith.constant 0 : index
      %c0_6 = arith.constant 0 : index
      %10 = vector.load %arg14[%c0_5, %c0_6] : memref<16x1xf32, #tpu.memory_space<vmem>>, vector<16x1xf32>
      %11 = tpu.reciprocal %10 {approx = true} : vector<16x1xf32> -> vector<16x1xf32>
      %12 = vector.broadcast %11 : vector<16x1xf32> to vector<16x16xf32>
      %13 = arith.mulf %9, %12 : vector<16x16xf32>
      %14 = vector.shape_cast %13 : vector<16x16xf32> to vector<2x8x16xf32>
      %c0_7 = arith.constant 0 : index
      %c0_8 = arith.constant 0 : index
      %c0_9 = arith.constant 0 : index
      %c0_10 = arith.constant 0 : index
      %15 = vector.load %arg11[%c0_7, %c0_8, %c0_9, %c0_10] : memref<1x2x8x16xf32, #tpu.memory_space<vmem>>, vector<1x2x8x16xf32>
      %16 = vector.shape_cast %15 : vector<1x2x8x16xf32> to vector<2x8x16xf32>
      %17 = vector.shape_cast %14 : vector<2x8x16xf32> to vector<1x2x8x16xf32>
      tpu.vector_store %arg11[%c0_7, %c0_8, %c0_9, %c0_10], %17 {strides = array<i32>} : memref<1x2x8x16xf32, #tpu.memory_space<vmem>>, vector<1x2x8x16xf32>,
    } else {
    }
    return
  }
  func.func @transform_0(%arg0: i32, %arg1: i32, %arg2: i32, %arg3: i32) -> (i32, i32, i32, i32) {
    %c0_i32 = arith.constant 0 : i32
    %c0_i32_0 = arith.constant 0 : i32
    return %arg0, %arg1, %arg2, %c0_i32 : i32, i32, i32, i32
  }
  func.func @transform_1(%arg0: i32, %arg1: i32, %arg2: i32, %arg3: i32) -> (i32, i32, i32, i32) {
    %0 = arith.minsi %arg3, %arg2 : i32
    %c0_i32 = arith.constant 0 : i32
    %c0_i32_0 = arith.constant 0 : i32
    return %arg0, %arg1, %0, %c0_i32 : i32, i32, i32, i32
  }
  func.func @transform_2(%arg0: i32, %arg1: i32, %arg2: i32, %arg3: i32) -> (i32, i32, i32, i32) {
    %0 = arith.minsi %arg3, %arg2 : i32
    %c0_i32 = arith.constant 0 : i32
    %c0_i32_0 = arith.constant 0 : i32
    return %arg0, %arg1, %0, %c0_i32 : i32, i32, i32, i32
  }
  func.func @transform_3(%arg0: i32, %arg1: i32, %arg2: i32, %arg3: i32) -> (i32, i32) {
    %c0_i32 = arith.constant 0 : i32
    %c0_i32_0 = arith.constant 0 : i32
    return %arg2, %c0_i32 : i32, i32
  }
  func.func @transform_4(%arg0: i32, %arg1: i32, %arg2: i32, %arg3: i32) -> (i32, i32) {
    %c0_i32 = arith.constant 0 : i32
    %c0_i32_0 = arith.constant 0 : i32
    return %arg2, %c0_i32 : i32, i32
  }
  func.func @transform_5(%arg0: i32, %arg1: i32, %arg2: i32, %arg3: i32) -> (i32, i32) {
    %0 = arith.minsi %arg3, %arg2 : i32
    %c0_i32 = arith.constant 0 : i32
    %c0_i32_0 = arith.constant 0 : i32
    return %0, %c0_i32 : i32, i32
  }
  func.func @transform_6(%arg0: i32, %arg1: i32, %arg2: i32, %arg3: i32) -> (i32, i32) {
    %0 = arith.minsi %arg3, %arg2 : i32
    %c0_i32 = arith.constant 0 : i32
    %c0_i32_0 = arith.constant 0 : i32
    return %0, %c0_i32 : i32, i32
  }
  func.func @transform_7(%arg0: i32, %arg1: i32, %arg2: i32, %arg3: i32) -> (i32, i32, i32, i32) {
    %c0_i32 = arith.constant 0 : i32
    %c0_i32_0 = arith.constant 0 : i32
    return %arg0, %arg1, %arg2, %c0_i32 : i32, i32, i32, i32
  }
}

module attributes {stable_mosaic.version = 11 : i64} {
  func.func @_matmul_residual_kernel(%arg0: i32, %arg1: i32, %arg2: i32, %arg3: memref<16x64xf32, #tpu.memory_space<vmem>>, %arg4: memref<64x64xbf16, #tpu.memory_space<vmem>>, %arg5: memref<16x64xf32, #tpu.memory_space<vmem>>, %arg6: memref<16x64xf32, #tpu.memory_space<vmem>>, %arg7: memref<16x64xf32, #tpu.memory_space<vmem>>) attributes {dimension_semantics = [#tpu.dimension_semantics<parallel>, #tpu.dimension_semantics<parallel>, #tpu.dimension_semantics<arbitrary>], iteration_bounds = array<i64: 1, 1, 1>, scalar_prefetch = 0 : i64, scratch_operands = 1 : i64, tpu.core_type = #tpu.core_type<tc>, window_params = [{transform_indices = @transform_0, window_bounds = array<i64: 16, 64>}, {transform_indices = @transform_1, window_bounds = array<i64: 64, 64>}, {transform_indices = @transform_2, window_bounds = array<i64: 16, 64>}, {transform_indices = @transform_3, window_bounds = array<i64: 16, 64>}]} {
    %c0_i32 = arith.constant 0 : i32
    %0 = arith.cmpi eq, %arg2, %c0_i32 : i32
    %1 = arith.extui %0 : i1 to i32
    %c0_i32_0 = arith.constant 0 : i32
    %2 = arith.cmpi ne, %1, %c0_i32_0 : i32
    scf.if %2 {
      %cst_10 = arith.constant 0.000000e+00 : f32
      %13 = vector.broadcast %cst_10 : f32 to vector<16x64xf32>
      %c0_11 = arith.constant 0 : index
      %c0_12 = arith.constant 0 : index
      %14 = vector.load %arg7[%c0_11, %c0_12] : memref<16x64xf32, #tpu.memory_space<vmem>>, vector<16x64xf32>
      tpu.vector_store %arg7[%c0_11, %c0_12], %13 {strides = array<i32>} : memref<16x64xf32, #tpu.memory_space<vmem>>, vector<16x64xf32>,
    } else {
    }
    %c0 = arith.constant 0 : index
    %c0_1 = arith.constant 0 : index
    %3 = vector.load %arg7[%c0, %c0_1] : memref<16x64xf32, #tpu.memory_space<vmem>>, vector<16x64xf32>
    %c0_2 = arith.constant 0 : index
    %c0_3 = arith.constant 0 : index
    %4 = vector.load %arg3[%c0_2, %c0_3] : memref<16x64xf32, #tpu.memory_space<vmem>>, vector<16x64xf32>
    %5 = arith.truncf %4 : vector<16x64xf32> to vector<16x64xbf16>
    %c0_4 = arith.constant 0 : index
    %c0_5 = arith.constant 0 : index
    %6 = vector.load %arg4[%c0_4, %c0_5] : memref<64x64xbf16, #tpu.memory_space<vmem>>, vector<64x64xbf16>
    %cst = arith.constant dense<0.000000e+00> : vector<16x64xf32>
    %7 = tpu.matmul %5, %6, %cst {dimension_numbers = #tpu.dot_dimension_numbers<[1], [0], [0], [1], [0, 0, 1, 1], [], []>} : vector<16x64xbf16>, vector<64x64xbf16>, vector<16x64xf32> -> vector<16x64xf32>
    %8 = arith.addf %3, %7 : vector<16x64xf32>
    %c0_6 = arith.constant 0 : index
    %c0_7 = arith.constant 0 : index
    %9 = vector.load %arg7[%c0_6, %c0_7] : memref<16x64xf32, #tpu.memory_space<vmem>>, vector<16x64xf32>
    tpu.vector_store %arg7[%c0_6, %c0_7], %8 {strides = array<i32>} : memref<16x64xf32, #tpu.memory_space<vmem>>, vector<16x64xf32>,
    %c0_i32_8 = arith.constant 0 : i32
    %10 = arith.cmpi eq, %arg2, %c0_i32_8 : i32
    %11 = arith.extui %10 : i1 to i32
    %c0_i32_9 = arith.constant 0 : i32
    %12 = arith.cmpi ne, %11, %c0_i32_9 : i32
    scf.if %12 {
      %c0_10 = arith.constant 0 : index
      %c0_11 = arith.constant 0 : index
      %13 = vector.load %arg7[%c0_10, %c0_11] : memref<16x64xf32, #tpu.memory_space<vmem>>, vector<16x64xf32>
      %c0_12 = arith.constant 0 : index
      %c0_13 = arith.constant 0 : index
      %14 = vector.load %arg5[%c0_12, %c0_13] : memref<16x64xf32, #tpu.memory_space<vmem>>, vector<16x64xf32>
      %15 = arith.addf %13, %14 : vector<16x64xf32>
      %c0_14 = arith.constant 0 : index
      %c0_15 = arith.constant 0 : index
      %16 = vector.load %arg6[%c0_14, %c0_15] : memref<16x64xf32, #tpu.memory_space<vmem>>, vector<16x64xf32>
      tpu.vector_store %arg6[%c0_14, %c0_15], %15 {strides = array<i32>} : memref<16x64xf32, #tpu.memory_space<vmem>>, vector<16x64xf32>,
    } else {
    }
    return
  }
  func.func @transform_0(%arg0: i32, %arg1: i32, %arg2: i32) -> (i32, i32) {
    %c0_i32 = arith.constant 0 : i32
    return %arg0, %arg2 : i32, i32
  }
  func.func @transform_1(%arg0: i32, %arg1: i32, %arg2: i32) -> (i32, i32) {
    %c0_i32 = arith.constant 0 : i32
    return %arg2, %arg1 : i32, i32
  }
  func.func @transform_2(%arg0: i32, %arg1: i32, %arg2: i32) -> (i32, i32) {
    %c0_i32 = arith.constant 0 : i32
    return %arg0, %arg1 : i32, i32
  }
  func.func @transform_3(%arg0: i32, %arg1: i32, %arg2: i32) -> (i32, i32) {
    %c0_i32 = arith.constant 0 : i32
    return %arg0, %arg1 : i32, i32
  }
}

module attributes {stable_mosaic.version = 11 : i64} {
  func.func @_rmsnorm_ffn_kernel(%arg0: i32, %arg1: i32, %arg2: memref<16x64xf32, #tpu.memory_space<vmem>>, %arg3: memref<1x64xf32, #tpu.memory_space<vmem>>, %arg4: memref<64x128xbf16, #tpu.memory_space<vmem>>, %arg5: memref<64x128xbf16, #tpu.memory_space<vmem>>, %arg6: memref<128x64xbf16, #tpu.memory_space<vmem>>, %arg7: memref<16x64xf32, #tpu.memory_space<vmem>>, %arg8: memref<16x64xbf16, #tpu.memory_space<vmem>>, %arg9: memref<16x64xf32, #tpu.memory_space<vmem>>) attributes {dimension_semantics = [#tpu.dimension_semantics<parallel>, #tpu.dimension_semantics<arbitrary>], iteration_bounds = array<i64: 1, 1>, scalar_prefetch = 0 : i64, scratch_operands = 2 : i64, tpu.core_type = #tpu.core_type<tc>, window_params = [{transform_indices = @transform_0, window_bounds = array<i64: 16, 64>}, {pipeline_mode = #tpu.pipeline_mode<synchronous>, transform_indices = @transform_1, window_bounds = array<i64: 1, 64>}, {transform_indices = @transform_2, window_bounds = array<i64: 64, 128>}, {transform_indices = @transform_3, window_bounds = array<i64: 64, 128>}, {transform_indices = @transform_4, window_bounds = array<i64: 128, 64>}, {transform_indices = @transform_5, window_bounds = array<i64: 16, 64>}]} {
    %c0_i32 = arith.constant 0 : i32
    %0 = arith.cmpi eq, %arg1, %c0_i32 : i32
    %1 = arith.extui %0 : i1 to i32
    %c0_i32_0 = arith.constant 0 : i32
    %2 = arith.cmpi ne, %1, %c0_i32_0 : i32
    scf.if %2 {
      %c0_17 = arith.constant 0 : index
      %c0_18 = arith.constant 0 : index
      %31 = vector.load %arg2[%c0_17, %c0_18] : memref<16x64xf32, #tpu.memory_space<vmem>>, vector<16x64xf32>
      %32 = arith.mulf %31, %31 : vector<16x64xf32>
      %cst_19 = arith.constant dense<0.000000e+00> : vector<16xf32>
      %33 = vector.multi_reduction <add>, %32, %cst_19 [1] : vector<16x64xf32> to vector<16xf32>
      %34 = vector.shape_cast %33 : vector<16xf32> to vector<16x1xf32>
      %cst_20 = arith.constant 6.400000e+01 : f32
      %35 = vector.broadcast %cst_20 : f32 to vector<16x1xf32>
      %36 = arith.divf %34, %35 : vector<16x1xf32>
      %cst_21 = arith.constant 9.99999974E-6 : f32
      %37 = vector.broadcast %cst_21 : f32 to vector<16x1xf32>
      %38 = arith.addf %36, %37 : vector<16x1xf32>
      %39 = math.rsqrt %38 : vector<16x1xf32>
      %40 = vector.broadcast %39 : vector<16x1xf32> to vector<16x64xf32>
      %41 = arith.mulf %31, %40 : vector<16x64xf32>
      %c0_22 = arith.constant 0 : index
      %c0_23 = arith.constant 0 : index
      %42 = vector.load %arg3[%c0_22, %c0_23] : memref<1x64xf32, #tpu.memory_space<vmem>>, vector<1x64xf32>
      %43 = vector.broadcast %42 : vector<1x64xf32> to vector<16x64xf32>
      %44 = arith.mulf %41, %43 : vector<16x64xf32>
      %45 = arith.truncf %44 : vector<16x64xf32> to vector<16x64xbf16>
      %c0_24 = arith.constant 0 : index
      %c0_25 = arith.constant 0 : index
      %46 = vector.load %arg8[%c0_24, %c0_25] : memref<16x64xbf16, #tpu.memory_space<vmem>>, vector<16x64xbf16>
      tpu.vector_store %arg8[%c0_24, %c0_25], %45 {strides = array<i32>} : memref<16x64xbf16, #tpu.memory_space<vmem>>, vector<16x64xbf16>,
      %cst_26 = arith.constant 0.000000e+00 : f32
      %47 = vector.broadcast %cst_26 : f32 to vector<16x64xf32>
      %c0_27 = arith.constant 0 : index
      %c0_28 = arith.constant 0 : index
      %48 = vector.load %arg9[%c0_27, %c0_28] : memref<16x64xf32, #tpu.memory_space<vmem>>, vector<16x64xf32>
      tpu.vector_store %arg9[%c0_27, %c0_28], %47 {strides = array<i32>} : memref<16x64xf32, #tpu.memory_space<vmem>>, vector<16x64xf32>,
    } else {
    }
    %c0 = arith.constant 0 : index
    %c0_1 = arith.constant 0 : index
    %3 = vector.load %arg8[%c0, %c0_1] : memref<16x64xbf16, #tpu.memory_space<vmem>>, vector<16x64xbf16>
    %c0_i32_2 = arith.constant 0 : i32
    %c1_i32 = arith.constant 1 : i32
    %4 = arith.muli %c0_i32_2, %c1_i32 : i32
    %c0_i32_3 = arith.constant 0 : i32
    %5 = arith.addi %c0_i32_3, %4 : i32
    %c128_i32 = arith.constant 128 : i32
    %6 = arith.muli %5, %c128_i32 : i32
    %7 = tpu.assume_multiple %6, 128 : i32
    %c0_4 = arith.constant 0 : index
    %8 = arith.index_cast %7 : i32 to index
    %9 = vector.load %arg4[%c0_4, %8] : memref<64x128xbf16, #tpu.memory_space<vmem>>, vector<64x128xbf16>
    %cst = arith.constant dense<0.000000e+00> : vector<16x128xf32>
    %10 = tpu.matmul %3, %9, %cst {dimension_numbers = #tpu.dot_dimension_numbers<[1], [0], [0], [1], [0, 0, 1, 1], [], []>} : vector<16x64xbf16>, vector<64x128xbf16>, vector<16x128xf32> -> vector<16x128xf32>
    %c0_5 = arith.constant 0 : index
    %11 = arith.index_cast %7 : i32 to index
    %12 = vector.load %arg5[%c0_5, %11] : memref<64x128xbf16, #tpu.memory_space<vmem>>, vector<64x128xbf16>
    %cst_6 = arith.constant dense<0.000000e+00> : vector<16x128xf32>
    %13 = tpu.matmul %3, %12, %cst_6 {dimension_numbers = #tpu.dot_dimension_numbers<[1], [0], [0], [1], [0, 0, 1, 1], [], []>} : vector<16x64xbf16>, vector<64x128xbf16>, vector<16x128xf32> -> vector<16x128xf32>
    %14 = arith.negf %10 : vector<16x128xf32>
    %15 = math.exp %14 : vector<16x128xf32>
    %cst_7 = arith.constant 1.000000e+00 : f32
    %16 = vector.broadcast %cst_7 : f32 to vector<16x128xf32>
    %17 = arith.addf %16, %15 : vector<16x128xf32>
    %18 = arith.divf %16, %17 : vector<16x128xf32>
    %19 = arith.mulf %10, %18 : vector<16x128xf32>
    %20 = arith.mulf %19, %13 : vector<16x128xf32>
    %c0_8 = arith.constant 0 : index
    %c0_9 = arith.constant 0 : index
    %21 = vector.load %arg9[%c0_8, %c0_9] : memref<16x64xf32, #tpu.memory_space<vmem>>, vector<16x64xf32>
    %22 = arith.truncf %20 : vector<16x128xf32> to vector<16x128xbf16>
    %23 = arith.index_cast %7 : i32 to index
    %c0_10 = arith.constant 0 : index
    %24 = vector.load %arg6[%23, %c0_10] : memref<128x64xbf16, #tpu.memory_space<vmem>>, vector<128x64xbf16>
    %cst_11 = arith.constant dense<0.000000e+00> : vector<16x64xf32>
    %25 = tpu.matmul %22, %24, %cst_11 {dimension_numbers = #tpu.dot_dimension_numbers<[1], [0], [0], [1], [0, 0, 1, 1], [], []>} : vector<16x128xbf16>, vector<128x64xbf16>, vector<16x64xf32> -> vector<16x64xf32>
    %26 = arith.addf %21, %25 : vector<16x64xf32>
    %c0_12 = arith.constant 0 : index
    %c0_13 = arith.constant 0 : index
    %27 = vector.load %arg9[%c0_12, %c0_13] : memref<16x64xf32, #tpu.memory_space<vmem>>, vector<16x64xf32>
    tpu.vector_store %arg9[%c0_12, %c0_13], %26 {strides = array<i32>} : memref<16x64xf32, #tpu.memory_space<vmem>>, vector<16x64xf32>,
    %c1_i32_14 = arith.constant 1 : i32
    %c0_i32_15 = arith.constant 0 : i32
    %28 = arith.cmpi eq, %arg1, %c0_i32_15 : i32
    %29 = arith.extui %28 : i1 to i32
    %c0_i32_16 = arith.constant 0 : i32
    %30 = arith.cmpi ne, %29, %c0_i32_16 : i32
    scf.if %30 {
      %c0_17 = arith.constant 0 : index
      %c0_18 = arith.constant 0 : index
      %31 = vector.load %arg9[%c0_17, %c0_18] : memref<16x64xf32, #tpu.memory_space<vmem>>, vector<16x64xf32>
      %c0_19 = arith.constant 0 : index
      %c0_20 = arith.constant 0 : index
      %32 = vector.load %arg2[%c0_19, %c0_20] : memref<16x64xf32, #tpu.memory_space<vmem>>, vector<16x64xf32>
      %33 = arith.addf %31, %32 : vector<16x64xf32>
      %c0_21 = arith.constant 0 : index
      %c0_22 = arith.constant 0 : index
      %34 = vector.load %arg7[%c0_21, %c0_22] : memref<16x64xf32, #tpu.memory_space<vmem>>, vector<16x64xf32>
      tpu.vector_store %arg7[%c0_21, %c0_22], %33 {strides = array<i32>} : memref<16x64xf32, #tpu.memory_space<vmem>>, vector<16x64xf32>,
    } else {
    }
    return
  }
  func.func @transform_0(%arg0: i32, %arg1: i32) -> (i32, i32) {
    %c0_i32 = arith.constant 0 : i32
    %c0_i32_0 = arith.constant 0 : i32
    return %arg0, %c0_i32 : i32, i32
  }
  func.func @transform_1(%arg0: i32, %arg1: i32) -> (i32, i32) {
    %c0_i32 = arith.constant 0 : i32
    %c0_i32_0 = arith.constant 0 : i32
    %c0_i32_1 = arith.constant 0 : i32
    return %c0_i32, %c0_i32_0 : i32, i32
  }
  func.func @transform_2(%arg0: i32, %arg1: i32) -> (i32, i32) {
    %c0_i32 = arith.constant 0 : i32
    %c0_i32_0 = arith.constant 0 : i32
    return %c0_i32, %arg1 : i32, i32
  }
  func.func @transform_3(%arg0: i32, %arg1: i32) -> (i32, i32) {
    %c0_i32 = arith.constant 0 : i32
    %c0_i32_0 = arith.constant 0 : i32
    return %c0_i32, %arg1 : i32, i32
  }
  func.func @transform_4(%arg0: i32, %arg1: i32) -> (i32, i32) {
    %c0_i32 = arith.constant 0 : i32
    %c0_i32_0 = arith.constant 0 : i32
    return %arg1, %c0_i32 : i32, i32
  }
  func.func @transform_5(%arg0: i32, %arg1: i32) -> (i32, i32) {
    %c0_i32 = arith.constant 0 : i32
    %c0_i32_0 = arith.constant 0 : i32
    return %arg0, %c0_i32 : i32, i32
  }
}

</mosaic_0001>

<bundles_post_ra>
// kernel: _lambda_.4
= control target key start
LH: loop header
LB: loop body
LE: loop exit
PB: predicated region body
PF: predicated region fallthrough
CT: control target
= control target key end

     0   :  { %8 = vsyncpa [#allocation3], 0  ;;  %s196_s15 = smov [#allocation2]   ;;  %s197_s17 = smov 128   ;;  %s247_s0 = inlined_call_operand.hbm [shape: f32[16,64], index: 0, kind: input, shape index: {}]   ;;  %s248_s1 = inlined_call_operand.vmem [shape: f32[1,64], index: 1, kind: input, shape index: {}]   ;;  %s249_s2 = inlined_call_operand.vmem [shape: bf16[64,128], index: 2, kind: input, shape index: {}]   ;;  %s250_s3 = inlined_call_operand.vmem [shape: f32[16,128], index: 3, kind: output, shape index: {}]  }
   0x1   :  { %s13_s14 = sshll.u32 %s247_s0, 4  ;;  %s15_s16 = sshll.u32 %s196_s15, 4  ;;  %s14_s14 = int_to_ptr.hbm [resolvable:$true] %s13_s14  ;;  %s16_s16 = int_to_ptr.vmem [resolvable:$true] %s15_s16 }
   0x2   :  { %s198_s18 = smov 8  }
   0x3   :  { %21 = dma.hbm_to_vmem [thread:$0]  %s14_s14, 256, %s16_s16, [#allocation3], %s197_s17, %s197_s17, %s198_s18  }
   0x4   :  { %194 = dma.done.wait [#allocation3], 256  }
   0x5   :  { %195 = vsyncadd [#allocation3], 4294967040  ;;  %v31_v0 = vld [vmem:[#allocation2] sm:$0xff]  ;;  %vm35_vm0 = vcmask 523264   ;;  %v32_v2 = vld [vmem:[#allocation2 + $0x8] sm:$0xff]  ;;  %v199_v6 = vmov 64.0  }
   0x6   :  { %v33_v1 = vmul.f32 %v31_v0, %v31_v0  ;;  %v34_v4 = vmul.f32 %v32_v2, %v32_v2  ;;  %164 = vrcp.f32 %v199_v6  ;;  %v158_v10 = vld [vmem:[%s249_s2 + $0x18] sm:$0xff]  ;;  %v157_v12 = vld [vmem:[%s249_s2 + $0x10] sm:$0xff]  ;;  %v156_v14 = vld [vmem:[%s249_s2 + $0x8] sm:$0xff] }
   0x7   :  { %121 = vmatpush.bf16.msra.mxu0 %v158_v10  ;;  %v155_v16 = vld [vmem:[%s249_s2] sm:$0xff] }
   0x8   :  { %v36_v3 = vsel %vm35_vm0, %v33_v1, 0.0  ;;  %v39_v5 = vsel %vm35_vm0, %v34_v4, 0.0  ;;  %v163_v37 = vld [vmem:[%s248_s1] ss:$0 sm:$0xff] }
   0x9   :  { %37 = vadd.xlane.f32.xlu0 %v36_v3 }
   0xb   :  { %122 = vmatpush.bf16.msra.mxu0 %v157_v12 }
   0xc   :  { %v165_v7 = vpop.eup %164 }
   0xd   :  { %v43_v8 = vmul.f32 64.0, %v165_v7  ;;  %vm47_vm1 = vweird.f32 %v165_v7 }
   0xf   :  { %v44_v9 = vsub.f32 1.0, %v43_v8  ;;  %123 = vmatpush.bf16.msra.mxu0 %v156_v14 }
  0x11   :  { %40 = vadd.xlane.f32.xlu0 %v39_v5  ;;  %v45_v11 = vmul.f32 %v165_v7, %v44_v9 }
  0x13   :  { %v46_v13 = vadd.f32 %v165_v7, %v45_v11  ;;  %124 = vmatpush.bf16.msra.mxu0 %v155_v16 }
  0x15   :  { %v48_v15 = vsel %vm47_vm1, %v165_v7, %v46_v13 }
  0x7c   :  { %v38_v17 = vpop.xlane.xlu0 %37 }
  0x7d   :  { %v49_v18 = vmul.f32 %v48_v15, %v38_v17 }
  0x7f   :  { %v51_v19 = vadd.f32 1e-05, %v49_v18 }
  0x81   :  { %166 = vrsqrt.f32 %v51_v19  ;;  %vm59_vm3 = vweird.f32 %v51_v19 }
  0x84   :  { %v41_v20 = vpop.xlane.xlu0 %40 }
  0x85   :  { %v50_v21 = vmul.f32 %v48_v15, %v41_v20 }
  0x87   :  { %v167_v22 = vpop.eup %166  ;;  %v52_v23 = vadd.f32 1e-05, %v50_v21 }
  0x88   :  { %v54_v24 = vmul.f32 %v167_v22, %v51_v19  ;;  %vm60_vm2 = vweird.f32 %v167_v22 }
  0x89   :  { %168 = vrsqrt.f32 %v52_v23  ;;  %vm61_vm4 = vmor %vm59_vm3, %vm60_vm2  ;;  %vm69_vm6 = vweird.f32 %v52_v23 }
  0x8a   :  { %v55_v25 = vmul.f32 %v167_v22, %v54_v24 }
  0x8c   :  { %v56_v26 = vmul.f32 0.5, %v55_v25 }
  0x8e   :  { %v57_v27 = vsub.f32 1.5, %v56_v26 }
  0x8f   :  { %v169_v28 = vpop.eup %168 }
  0x90   :  { %v64_v29 = vmul.f32 %v169_v28, %v52_v23  ;;  %v58_v30 = vmul.f32 %v167_v22, %v57_v27  ;;  %vm70_vm5 = vweird.f32 %v169_v28 }
  0x91   :  { %vm71_vm7 = vmor %vm69_vm6, %vm70_vm5 }
  0x92   :  { %v65_v31 = vmul.f32 %v169_v28, %v64_v29  ;;  %v62_v33 = vsel %vm61_vm4, %v167_v22, %v58_v30 }
  0x93   :  { %v73_v36 = vmul.f32 %v62_v33, %v31_v0 }
  0x94   :  { %v66_v32 = vmul.f32 0.5, %v65_v31 }
  0x95   :  { %v79_v40 = vmul.f32 %v163_v37, %v73_v36 }
  0x96   :  { %v67_v34 = vsub.f32 1.5, %v66_v32 }
  0x98   :  { %v68_v35 = vmul.f32 %v169_v28, %v67_v34 }
  0x9a   :  { %v72_v38 = vsel %vm71_vm7, %v169_v28, %v68_v35 }
  0x9b   :  { %v74_v39 = vmul.f32 %v72_v38, %v32_v2 }
  0x9d   :  { %v80_v41 = vmul.f32 %v163_v37, %v74_v39 }
  0x9f   :  { %v81_v42 = vpack.c.bf16 %v80_v41, %v79_v40 }
  0xa1   :  { %154 = vmatmul.msk.bf16.vlgmr.msra.gmra.mxu0 %vm35_vm0, %v81_v42 }
 0x11e   :  { %v126_v43 = vpop.f32.mrf.mxu0 }
 0x11f   :  { %131 = vst [vmem:[%s250_s3] sm:$0xff] %v126_v43 }
 0x126   :  { %v128_v44 = vpop.f32.mrf.mxu0 }
 0x127   :  { %132 = vst [vmem:[%s250_s3 + $0x8] sm:$0xff] %v128_v44 }
 0x128   :  { %137 = vsyncpa [#allocation3], 1 }

// kernel: _lambda_.6
= control target key start
LH: loop header
LB: loop body
LE: loop exit
PB: predicated region body
PF: predicated region fallthrough
CT: control target
= control target key end

     0   :  { %vm19_vm0 = vcmask 523264   ;;  %v118_v1 = vmov 0.0   ;;  %s176_s1 = inlined_call_operand.vmem [shape: bf16[64,64], index: 1, kind: input, shape index: {}]   ;;  %s177_s0 = inlined_call_operand.vmem [shape: f32[16,64], index: 0, kind: input, shape index: {}]   ;;  %s178_s2 = inlined_call_operand.vmem [shape: f32[16,64], index: 2, kind: input, shape index: {}]   ;;  %s179_s3 = inlined_call_operand.vmem [shape: f32[16,64], index: 3, kind: output, shape index: {}]  }
   0x1   :  { %v116_v0 = vld [vmem:[%s176_s1 + $0x18] sm:$0xff]  ;;  %20 = vst.msk [vmem:[#allocation2] sm:$0xff] %vm19_vm0, %v118_v1  ;;  %v115_v2 = vld [vmem:[%s176_s1 + $0x10] sm:$0xff]  ;;  %v114_v3 = vld [vmem:[%s176_s1 + $0x8] sm:$0xff] }
   0x2   :  { %21 = vst.msk [vmem:[#allocation2 + $0x8] sm:$0xff] %vm19_vm0, %v118_v1  ;;  %67 = vmatpush.bf16.msra.mxu0 %v116_v0  ;;  %v113_v4 = vld [vmem:[%s176_s1] sm:$0xff]  ;;  %v25_v6 = vld [vmem:[%s177_s0 + $0x8] sm:$0xff] }
   0x3   :  { %v24_v5 = vld [vmem:[%s177_s0] sm:$0xff]  ;;  %v87_v17 = vld [vmem:[%s178_s2 + $0x8] sm:$0xff] }
   0x4   :  { %v26_v7 = vpack.c.bf16 %v25_v6, %v24_v5  ;;  %v86_v12 = vld [vmem:[%s178_s2] sm:$0xff] }
   0x6   :  { %68 = vmatpush.bf16.msra.mxu0 %v115_v2 }
   0x8   :  { %v22_v8 = vld [vmem:[#allocation2] sm:$0xff] }
   0x9   :  { %v23_v11 = vld [vmem:[#allocation2 + $0x8] sm:$0xff] }
   0xa   :  { %69 = vmatpush.bf16.msra.mxu0 %v114_v3 }
   0xe   :  { %70 = vmatpush.bf16.msra.mxu0 %v113_v4 }
  0x11   :  { %112 = vmatmul.msk.bf16.vlgmr.msra.gmra.mxu0 %vm19_vm0, %v26_v7 }
  0x8e   :  { %v72_v9 = vpop.f32.mrf.mxu0 }
  0x8f   :  { %v77_v10 = vadd.f32 %v72_v9, %v22_v8 }
  0x91   :  { %79 = vst.msk [vmem:[#allocation2] sm:$0xff] %vm19_vm0, %v77_v10 }
  0x96   :  { %v74_v13 = vpop.f32.mrf.mxu0 }
  0x97   :  { %v78_v14 = vadd.f32 %v74_v13, %v23_v11 }
  0x98   :  { %v84_v15 = vld [vmem:[#allocation2] sm:$0xff] }
  0x99   :  { %v88_v16 = vadd.f32 %v86_v12, %v84_v15  ;;  %80 = vst.msk [vmem:[#allocation2 + $0x8] sm:$0xff] %vm19_vm0, %v78_v14 }
  0x9b   :  { %90 = vst.msk [vmem:[%s179_s3] sm:$0xff] %vm19_vm0, %v88_v16 }
  0xa0   :  { %v85_v18 = vld [vmem:[#allocation2 + $0x8] sm:$0xff] }
  0xa1   :  { %v89_v19 = vadd.f32 %v87_v17, %v85_v18 }
  0xa3   :  { %91 = vst.msk [vmem:[%s179_s3 + $0x8] sm:$0xff] %vm19_vm0, %v89_v19 }

// kernel: _lambda_.5
= control target key start
LH: loop header
LB: loop body
LE: loop exit
PB: predicated region body
PF: predicated region fallthrough
CT: control target
= control target key end

     0   :  { %s1172_s24 = smov 0   ;;  %s1174_s25 = smov 0   ;;  %s1279_s0 = inlined_call_operand.vmem [shape: f32[2,4,8,16], index: 0, kind: input, shape index: {}]   ;;  %s1280_s1 = inlined_call_operand.vmem [shape: f32[2,2,8,16], index: 1, kind: input, shape index: {}]   ;;  %s1281_s2 = inlined_call_operand.vmem [shape: f32[2,2,8,16], index: 2, kind: input, shape index: {}]   ;;  %s1282_s3 = inlined_call_operand.vmem [shape: f32[8,16], index: 3, kind: input, shape index: {}, may-alias: {3,5}]   ;;  %s1283_s4 = inlined_call_operand.vmem [shape: f32[8,16], index: 4, kind: input, shape index: {}, may-alias: {4,6}]   ;;  %s1284_s5 = inlined_call_operand.vmem [shape: f32[8,16], index: 5, kind: input, shape index: {}, may-alias: {3,5}]   ;;  %s1285_s6 = inlined_call_operand.vmem [shape: f32[8,16], index: 6, kind: input, shape index: {}, may-alias: {4,6}]   ;;  %s1286_s7 = inlined_call_operand.vmem [shape: f32[2,4,8,16], index: 7, kind: output, shape index: {}]  }
   0x1   :  { %s1176_s26 = smov 0   ;;  %s1178_s27 = smov 0  }
   0x2   :  { %s1180_s28 = smov 0  }
   0x3 LB: > { %s39_s29 = sadd.s32 1, %s1117_s26  ;;  %s43_s30 = sadd.s32 1, %s1121_s27  ;;  %s1125_s28 = sphi %s1180_s28, %s17_s28   ;;  %s1121_s27 = sphi %s1178_s27, %s1290_s27   ;;  %s1117_s26 = sphi %s1176_s26, %s1289_s26   ;;  %s1113_s25 = sphi %s1174_s25, %s1288_s25   ;;  %s1109_s24 = sphi %s1172_s24, %s1287_s24  }
   0x4   : > { %p41_p0 = scmp.ge.s32.totalorder %s39_s29, 2  ;;  %p1007_p1 = scmp.ge.s32.totalorder %s1125_s28, 1 }
   0x5   : > { %p387_p2 = scmp.lt.s32.totalorder %s1125_s28, 5 }
   0x6   : > { %s1292_s29 = smov (%p41_p0, %s39_s29), 0  ;;  %s1294_s30 = smov (!%p41_p0, %s43_s30), %s1121_s27 }
   0x7   : > { %p388_p3 = pnand %p1007_p1, %p387_p2  ;;  %p45_p4 = scmp.ge.s32.totalorder %s1294_s30, 2 }
   0x8   : > { %s1008_s8 = sshll.u32 (!%p388_p3), %s1109_s24, 1  ;;  %p480_p5 = scmp.lt.s32.totalorder (!%p388_p3), %s1113_s25, 1 }
   0x9   : > { %s1296_s30 = smov (%p45_p4, %s1294_s30), 0  ;;  %391 = sbr.rel (%p388_p3) target bundleno = 770 (0x302), region = 48 }
   0xa   : > { %p482_p6 = scmp.lt.s32.totalorder (!%p388_p3), %s1008_s8, 3  ;;  %p496_p7 = scmp.lt.s32.totalorder (!%p388_p3), %s1109_s24, 1 }
   0xb   : > { %s1127_s16 = smov (!%p388_p3), 8   ;;  %s1128_s18 = smov (!%p388_p3), 120  }
   0xe   : > { %s1298_s25 = smov (!%p480_p5, %s1113_s25), 1  ;;  %s1300_s8 = smov (!%p482_p6, %s1008_s8), 3  ;;  %vm607_vm0 = vcmask 130048   ;;  %v626_v7 = vld [vmem:[%s1284_s5] sm:$0xff]  ;;  %v1129_v8 = vmov 0.0   ;;  %vm584_vm1 = vcmask 64512   ;;  %v661_v37 = vlaneseq }
   0xf   : > { %s1009_s9 = sshll.u32 %s1298_s25, 2  ;;  %s1011_s15 = sshll.u32 %s1298_s25, 1  ;;  %608 = vst.msk [vmem:[#allocation5] sm:$0xff] %vm607_vm0, %v1129_v8  ;;  %v628_v9 = vld [vmem:[%s1285_s6] sm:$0xff]  ;;  %vm599_vm2 = vcmask 125952   ;;  %vm602_vm3 = vcmask 7168  }
  0x10   : > { %s1202_s10 = sadd.s32 %s1009_s9, %s1300_s8  ;;  %s1302_s24 = smov (!%p496_p7, %s1109_s24), 1  ;;  %609 = vst.msk [vmem:[#allocation5 + $0x8] sm:$0xff] %vm607_vm0, %v1129_v8  ;;  %v587_v16 = vld [vmem:[%s1282_s3] sm:$0xff]  ;;  %v1130_v36 = vmov -1e+30   ;;  %v662_v38 = vshrl.u32 %v661_v37, 7 }
  0x11   : > { %s1010_s11 = sshll.u32 %s1202_s10, 3  ;;  %s1210_s17 = sadd.s32 %s1011_s15, %s1302_s24  ;;  %v588_v19 = vld [vmem:[%s1283_s4] sm:$0xff]  ;;  %603 = vst.msk [vmem:[#allocation3] sm:$0xff] %vm602_vm3, %v1130_v36  ;;  %v667_v39 = vand.u32 127, %v661_v37  ;;  %v1131_v46 = vmov 0   ;;  %vm740_vm5 = vcmask 1043456  }
  0x12   : > { %s490_s14 = scalar_lea.vmem %s1279_s0, %s1010_s11  ;;  %s1012_s19 = sshll.u32 %s1210_s17, 3  ;;  %604 = vst.msk [vmem:[#allocation3 + $0x8] sm:$0xff] %vm602_vm3, %v1130_v36  ;;  %1072 = vset.pattern.permute.xlu2 %v1131_v46  ;;  %1073 = vset.pattern.permute.xlu1 %v1131_v46 }
  0x13   : > { %v564_v0 = vld [vmem:[%s490_s14] sm:$0xff]  ;;  %v565_v2 = vld [vmem:[%s490_s14 + $0x8] sm:$0xff]  ;;  %s504_s22 = scalar_lea.vmem %s1280_s1, %s1012_s19  ;;  %605 = vst.msk [vmem:[#allocation4] sm:$0xff] %vm602_vm3, %v1129_v8  ;;  %vm670_vm4 = vcmp.ge.s32.totalorder %v662_v38, %v667_v39  ;;  %1074 = vset.pattern.permute.xlu0 %v1131_v46  ;;  %s557_s20 = scalar_lea.vmem %s1286_s7, %s1010_s11 }
  0x14   : > { %578 = vrot.lane.b32.xlu1 %v564_v0, %s1127_s16  ;;  %v566_v1 = vsub.f32 0.0, %v564_v0  ;;  %v614_v3 = vld [vmem:[%s504_s22] sm:$0xff]  ;;  %v567_v5 = vsub.f32 0.0, %v565_v2  ;;  %v589_v20 = vmul.f32 %v587_v16, %v564_v0  ;;  %v590_v27 = vmul.f32 %v587_v16, %v565_v2  ;;  %606 = vst.msk [vmem:[#allocation4 + $0x8] sm:$0xff] %vm602_vm3, %v1129_v8 }
  0x15   : > { %v615_v4 = vsub.f32 0.0, %v614_v3  ;;  %v627_v11 = vmul.f32 %v626_v7, %v614_v3 }
  0x16   : > { %570 = vrot.lane.b32.xlu0 %v566_v1, %s1128_s18 }
  0x17   : > { %617 = vrot.lane.b32.xlu2 %v615_v4, %s1128_s18 }
  0x18   : > { %v673_v47 = vld [vmem:[#allocation3] sm:$0xff] }
  0x19   : > { %v674_v52 = vld [vmem:[#allocation3 + $0x8] sm:$0xff] }
  0x1c   : > { %580 = vrot.lane.b32.xlu1 %v565_v2, %s1127_s16 }
  0x1e   : > { %572 = vrot.lane.b32.xlu0 %v567_v5, %s1128_s18  ;;  %s519_s18 = scalar_lea.vmem %s1281_s2, %s1012_s19 }
  0x1f   : > { %621 = vrot.lane.b32.xlu2 %v614_v3, %s1127_s16  ;;  %v735_v57 = vld [vmem:[%s519_s18] sm:$0xff] }
  0x20   : > { %v736_v58 = vpack.c.bf16 %v735_v57, %v735_v57 }
  0x22   : > { %v742_v59 = vsel %vm740_vm5, %v736_v58, 0 }
  0x23   : > { %751 = vmatpush.bf16.msra.mxu1 %v742_v59 }
  0x71   : > { %v618_v6 = vpop.permute.xlu2 %617 }
  0x79   : > { %v622_v10 = vpop.permute.xlu2 %621 }
  0x7a   : > { %v625_v12 = vsel %vm584_vm1, %v618_v6, %v622_v10 }
  0x7b   : > { %v629_v13 = vmul.f32 %v628_v9, %v625_v12  ;;  %v705_v9 = vld [vmem:[#allocation4] sm:$0xff] }
  0x7d   : > { %v630_v14 = vadd.f32 %v629_v13, %v627_v11  ;;  %v706_v13 = vld [vmem:[#allocation4 + $0x8] sm:$0xff] }
  0x7f   : > { %v631_v15 = vpack.c.bf16 %v630_v14, %v630_v14 }
  0x81   : > { %v644_v17 = vsel %vm607_vm0, %v631_v15, 0 }
  0x82   : > { %653 = vmatpush.bf16.xpose.msra.mxu0 %v644_v17 }
  0x86   : > { %v579_v18 = vpop.permute.xlu1 %578 }
  0x88   : > { %v571_v21 = vpop.permute.xlu0 %570 }
  0x89   : > { %v585_v22 = vsel %vm584_vm1, %v571_v21, %v579_v18  ;;  %v720_v18 = vld [vmem:[#allocation5] sm:$0xff] }
  0x8a   : > { %v591_v23 = vmul.f32 %v588_v19, %v585_v22 }
  0x8c   : > { %v593_v24 = vadd.f32 %v591_v23, %v589_v20 }
  0x8e   : > { %v595_v25 = vmul.f32 0.25, %v593_v24  ;;  %v581_v26 = vpop.permute.xlu1 %580 }
  0x90   : > { %v597_v28 = vpack.c.bf16 %v595_v25, %v595_v25  ;;  %v573_v29 = vpop.permute.xlu0 %572 }
  0x91   : > { %v586_v30 = vsel %vm584_vm1, %v573_v29, %v581_v26  ;;  %v721_v26 = vld [vmem:[#allocation5 + $0x8] sm:$0xff] }
  0x92   : > { %600 = vst.msk [vmem:[#allocation2] sm:$0xf] %vm599_vm2, %v597_v28  ;;  %v592_v31 = vmul.f32 %v588_v19, %v586_v30 }
  0x94   : > { %v594_v32 = vadd.f32 %v592_v31, %v590_v27 }
  0x96   : > { %v596_v33 = vmul.f32 0.25, %v594_v32 }
  0x98   : > { %v598_v34 = vpack.c.bf16 %v596_v33, %v596_v33 }
  0x9a   : > { %601 = vst.msk [vmem:[#allocation2 + $0x4] sm:$0xf] %vm599_vm2, %v598_v34 }
  0xa1   : > { %v1026_v35 = vld [vmem:[#allocation2] sm:$0xff] }
  0xa2   : > { %1022 = vmatmul.msk.bf16.vlgmr.msra.gmra.mxu0 %vm607_vm0, %v1026_v35 }
 0x11f   : > { %v655_v40 = vpop.f32.mrf.mxu0 }
 0x120   : > { %v671_v41 = vsel %vm670_vm4, %v655_v40, -1e+30 }
 0x121   : > { %v675_v42 = vsel %vm584_vm1, %v671_v41, -inf }
 0x122   : > { %676 = vmax.xlane.f32.xlu0 %v675_v42 }
 0x127   : > { %v657_v43 = vpop.f32.mrf.mxu0 }
 0x128   : > { %v672_v44 = vsel %vm670_vm4, %v657_v43, -1e+30 }
 0x129   : > { %v678_v45 = vsel %vm584_vm1, %v672_v44, -inf }
 0x12a   : > { %679 = vmax.xlane.f32.xlu1 %v678_v45 }
 0x195   : > { %v677_v48 = vpop.xlane.xlu0 %676 }
 0x196   : > { %v681_v49 = vmax.f32 %v673_v47, %v677_v48 }
 0x198   : > { %v683_v50 = vsub.f32 %v673_v47, %v681_v49  ;;  %762 = vst.msk [vmem:[#allocation3] sm:$0xff] %vm602_vm3, %v681_v49  ;;  %691 = vperm.xlu2 %1072, %v681_v49  }
 0x19a   : > { %v685_v51 = vmul.f32 1.442695, %v683_v50 }
 0x19c   : > { %1075 = vpow2.f32 %v685_v51 }
 0x19d   : > { %v680_v53 = vpop.xlane.xlu1 %679 }
 0x19e   : > { %v682_v54 = vmax.f32 %v674_v52, %v680_v53 }
 0x1a0   : > { %v684_v55 = vsub.f32 %v674_v52, %v682_v54  ;;  %763 = vst.msk [vmem:[#allocation3 + $0x8] sm:$0xff] %vm602_vm3, %v682_v54  ;;  %696 = vperm.xlu2 %1072, %v682_v54  }
 0x1a2   : > { %v1076_v56 = vpop.eup %1075  ;;  %v687_v7 = vmul.f32 1.442695, %v684_v55 }
 0x1a3   : > { %724 = vperm.xlu1 %1073, %v1076_v56   ;;  %v707_v10 = vmul.f32 %v1076_v56, %v705_v9 }
 0x1f2   : > { %v692_v60 = vpop.permute.xlu2 %691 }
 0x1f3   : > { %v699_v61 = vsub.f32 %v671_v41, %v692_v60 }
 0x1f5   : > { %v701_v62 = vmul.f32 1.442695, %v699_v61 }
 0x1f7   : > { %1077 = vpow2.f32 %v701_v62 }
 0x1fa   : > { %v697_v63 = vpop.permute.xlu2 %696 }
 0x1fb   : > { %v700_v0 = vsub.f32 %v672_v44, %v697_v63 }
 0x1fd   : > { %v1078_v1 = vpop.eup %1077  ;;  %v703_v2 = vmul.f32 1.442695, %v700_v0 }
 0x1fe   : > { %v709_v3 = vsel %vm584_vm1, %v1078_v1, 0.0 }
 0x1ff   : > { %1079 = vpow2.f32 %v703_v2  ;;  %710 = vadd.xlane.f32.xlu2 %v709_v3 }
 0x200   : > { %1081 = vpow2.f32 %v687_v7 }
 0x205   : > { %v1080_v4 = vpop.eup %1079 }
 0x206   : > { %v712_v5 = vsel %vm584_vm1, %v1080_v4, 0.0  ;;  %v734_v6 = vpack.c.bf16 %v1080_v4, %v1078_v1  ;;  %v1082_v8 = vpop.eup %1081 }
 0x207   : > { %713 = vadd.xlane.f32.xlu0 %v712_v5  ;;  %v708_v14 = vmul.f32 %v1082_v8, %v706_v13 }
 0x208   : > { %1023 = vmatmul.msk.bf16.vlgmr.msra.gmra.mxu1 %vm584_vm1, %v734_v6 }
 0x215   : > { %v725_v19 = vpop.permute.xlu1 %724 }
 0x216   : > { %v732_v21 = vmul.f32 %v725_v19, %v720_v18 }
 0x21b   : > { %729 = vperm.xlu0 %1074, %v1082_v8  }
 0x272   : > { %v711_v11 = vpop.xlane.xlu2 %710 }
 0x273   : > { %v715_v12 = vadd.f32 %v711_v11, %v707_v10 }
 0x275   : > { %718 = vst.msk [vmem:[#allocation4] sm:$0xff] %vm602_vm3, %v715_v12 }
 0x27a   : > { %v714_v15 = vpop.xlane.xlu0 %713 }
 0x27b   : > { %v716_v16 = vadd.f32 %v714_v15, %v708_v14 }
 0x27c   : > { %v769_v17 = vld [vmem:[#allocation4] sm:$0xff] }
 0x27d   : > { %719 = vst.msk [vmem:[#allocation4 + $0x8] sm:$0xff] %vm602_vm3, %v716_v16  ;;  %1083 = vrcp.f32 %v769_v17 }
 0x283   : > { %v1084_v20 = vpop.eup %1083 }
 0x284   : > { %775 = vperm.xlu2 %1072, %v1084_v20   ;;  %v770_v22 = vld [vmem:[#allocation4 + $0x8] sm:$0xff] }
 0x285   : > { %v753_v23 = vpop.f32.mrf.mxu1  ;;  %1085 = vrcp.f32 %v770_v22 }
 0x286   : > { %v758_v24 = vadd.f32 %v753_v23, %v732_v21 }
 0x288   : > { %760 = vst.msk [vmem:[#allocation5] sm:$0xff] %vm607_vm0, %v758_v24 }
 0x28b   : > { %v1086_v25 = vpop.eup %1085 }
 0x28c   : > { %780 = vperm.xlu1 %1073, %v1086_v25  }
 0x28d   : > { %v730_v27 = vpop.permute.xlu0 %729  ;;  %v755_v29 = vpop.f32.mrf.mxu1 }
 0x28e   : > { %v733_v28 = vmul.f32 %v730_v27, %v721_v26 }
 0x28f   : > { %v767_v32 = vld [vmem:[#allocation5] sm:$0xff] }
 0x290   : > { %v759_v30 = vadd.f32 %v755_v29, %v733_v28 }
 0x292   : > { %761 = vst.msk [vmem:[#allocation5 + $0x8] sm:$0xff] %vm607_vm0, %v759_v30 }
 0x299   : > { %v768_v34 = vld [vmem:[#allocation5 + $0x8] sm:$0xff] }
 0x2de   : > { %v776_v31 = vpop.permute.xlu2 %775 }
 0x2df   : > { %v783_v33 = vmul.f32 %v776_v31, %v767_v32 }
 0x2e1   : > { %786 = vst.msk [vmem:[%s557_s20] sm:$0xff] %vm607_vm0, %v783_v33 }
 0x2fe   : > { %v781_v35 = vpop.permute.xlu1 %780 }
 0x2ff   : > { %v784_v36 = vmul.f32 %v781_v35, %v768_v34 }
 0x301   : > { %787 = vst.msk [vmem:[%s557_s20 + $0x8] sm:$0xff] %vm607_vm0, %v784_v36 }
 0x302 PF: > { %s17_s28 = sadd.s32 1, %s1125_s28   ;;  %s1287_s24 = smov %s1117_s26 }
 0x303   : > { %p14_p8 = scmp.ge.s32.totalorder %s17_s28, 6   ;;  %s1288_s25 = smov %s1121_s27 }
 0x304   : > { %s1289_s26 = smov %s1292_s29  ;;  %s1290_s27 = smov %s1296_s30 }
 0x305   :  { %16 = sbr.rel (!%p14_p8) target bundleno = 3 (0x3), region = 108 }

// kernel: _lambda_.7
= control target key start
LH: loop header
LB: loop body
LE: loop exit
PB: predicated region body
PF: predicated region fallthrough
CT: control target
= control target key end

     0   :  { %vm30_vm0 = vcmask 523264   ;;  %s594_s0 = inlined_call_operand.vmem [shape: f32[16,64], index: 0, kind: input, shape index: {}]   ;;  %s595_s1 = inlined_call_operand.vmem [shape: f32[1,64], index: 1, kind: input, shape index: {}]   ;;  %s596_s2 = inlined_call_operand.vmem [shape: bf16[64,128], index: 2, kind: input, shape index: {}]   ;;  %s597_s3 = inlined_call_operand.vmem [shape: bf16[64,128], index: 3, kind: input, shape index: {}]   ;;  %s598_s4 = inlined_call_operand.vmem [shape: bf16[128,64], index: 4, kind: input, shape index: {}]   ;;  %s599_s5 = inlined_call_operand.hbm [shape: f32[16,64], index: 5, kind: output, shape index: {}]  }
   0x1   :  { %v515_v0 = vld [vmem:[%s594_s0] sm:$0xff] }
   0x2   :  { %v28_v1 = vmul.f32 %v515_v0, %v515_v0 }
   0x3   :  { %10 = vsyncpa [#allocation5], 0  ;;  %v522_v2 = vld [vmem:[%s594_s0 + $0x8] sm:$0xff]  ;;  %v477_v6 = vmov 64.0   ;;  %v418_v12 = vld [vmem:[%s596_s2 + $0x18] sm:$0xff]  ;;  %vm78_vm5 = vcmask 519168  }
   0x4   :  { %v31_v3 = vsel %vm30_vm0, %v28_v1, 0.0  ;;  %v29_v4 = vmul.f32 %v522_v2, %v522_v2  ;;  %437 = vrcp.f32 %v477_v6  ;;  %v422_v13 = vld [vmem:[%s597_s3 + $0x18] sm:$0xff]  ;;  %130 = vmatpush.bf16.msra.mxu0 %v418_v12  ;;  %v417_v17 = vld [vmem:[%s596_s2 + $0x10] sm:$0xff]  ;;  %v416_v20 = vld [vmem:[%s596_s2 + $0x8] sm:$0xff]  ;;  %v478_v63 = vmov 0.0   ;;  %s330_s29 = sshll.u32 %s599_s5, 4  ;;  %s331_s29 = int_to_ptr.hbm [resolvable:$true] %s330_s29 }
   0x5   :  { %32 = vadd.xlane.f32.xlu0 %v31_v3  ;;  %176 = vmatpush.bf16.msra.mxu1 %v422_v13  ;;  %v421_v18 = vld [vmem:[%s597_s3 + $0x10] sm:$0xff]  ;;  %v420_v21 = vld [vmem:[%s597_s3 + $0x8] sm:$0xff]  ;;  %v415_v22 = vld [vmem:[%s596_s2] sm:$0xff]  ;;  %81 = vst.msk [vmem:[#allocation3] sm:$0xff] %vm30_vm0, %v478_v63  ;;  %s480_s30 = smov 128   ;;  %s481_s6 = smov 8  }
   0x6   :  { %v34_v5 = vsel %vm30_vm0, %v29_v4, 0.0  ;;  %v419_v23 = vld [vmem:[%s597_s3] sm:$0xff]  ;;  %v430_v49 = vld [vmem:[%s598_s4 + $0x38] sm:$0xff]  ;;  %v429_v50 = vld [vmem:[%s598_s4 + $0x30] sm:$0xff]  ;;  %82 = vst.msk [vmem:[#allocation3 + $0x8] sm:$0xff] %vm30_vm0, %v478_v63 }
   0x7   :  { %v436_v35 = vld [vmem:[%s595_s1] ss:$0 sm:$0xff]  ;;  %295 = vmatpush.bf16.msra.mxu2 %v430_v49  ;;  %v428_v51 = vld [vmem:[%s598_s4 + $0x28] sm:$0xff]  ;;  %v426_v53 = vld [vmem:[%s598_s4 + $0x18] sm:$0xff] }
   0x8   :  { %131 = vmatpush.bf16.msra.mxu0 %v417_v17  ;;  %v427_v52 = vld [vmem:[%s598_s4 + $0x20] sm:$0xff]  ;;  %v425_v54 = vld [vmem:[%s598_s4 + $0x10] sm:$0xff]  ;;  %v424_v57 = vld [vmem:[%s598_s4 + $0x8] sm:$0xff] }
   0x9   :  { %177 = vmatpush.bf16.msra.mxu1 %v421_v18  ;;  %v423_v58 = vld [vmem:[%s598_s4] sm:$0xff]  ;;  %s479_s4 = smov [#allocation4]  }
   0xa   :  { %v438_v7 = vpop.eup %437  ;;  %s328_s26 = sshll.u32 %s479_s4, 4  ;;  %s329_s26 = int_to_ptr.vmem [resolvable:$true] %s328_s26 }
   0xb   :  { %v38_v8 = vmul.f32 64.0, %v438_v7  ;;  %vm42_vm1 = vweird.f32 %v438_v7  ;;  %296 = vmatpush.bf16.msra.mxu2 %v429_v50 }
   0xc   :  { %132 = vmatpush.bf16.msra.mxu0 %v416_v20 }
   0xd   :  { %35 = vadd.xlane.f32.xlu0 %v34_v5  ;;  %v39_v9 = vsub.f32 1.0, %v38_v8  ;;  %178 = vmatpush.bf16.msra.mxu1 %v420_v21 }
   0xf   :  { %v40_v10 = vmul.f32 %v438_v7, %v39_v9  ;;  %297 = vmatpush.bf16.msra.mxu2 %v428_v51 }
  0x10   :  { %133 = vmatpush.bf16.msra.mxu0 %v415_v22 }
  0x11   :  { %v41_v11 = vadd.f32 %v438_v7, %v40_v10  ;;  %179 = vmatpush.bf16.msra.mxu1 %v419_v23 }
  0x13   :  { %v43_v14 = vsel %vm42_vm1, %v438_v7, %v41_v11  ;;  %298 = vmatpush.bf16.msra.mxu2 %v427_v52 }
  0x17   :  { %299 = vmatpush.bf16.msra.mxu2 %v426_v53 }
  0x1b   :  { %300 = vmatpush.bf16.msra.mxu2 %v425_v54 }
  0x1f   :  { %301 = vmatpush.bf16.msra.mxu2 %v424_v57 }
  0x23   :  { %302 = vmatpush.bf16.msra.mxu2 %v423_v58 }
  0x78   :  { %v33_v15 = vpop.xlane.xlu0 %32 }
  0x79   :  { %v44_v16 = vmul.f32 %v43_v14, %v33_v15 }
  0x7b   :  { %v46_v19 = vadd.f32 1e-05, %v44_v16 }
  0x7d   :  { %439 = vrsqrt.f32 %v46_v19  ;;  %vm54_vm3 = vweird.f32 %v46_v19 }
  0x80   :  { %v36_v24 = vpop.xlane.xlu0 %35 }
  0x81   :  { %v45_v25 = vmul.f32 %v43_v14, %v36_v24 }
  0x83   :  { %v440_v26 = vpop.eup %439  ;;  %v47_v27 = vadd.f32 1e-05, %v45_v25 }
  0x84   :  { %v49_v28 = vmul.f32 %v440_v26, %v46_v19  ;;  %vm55_vm2 = vweird.f32 %v440_v26 }
  0x85   :  { %441 = vrsqrt.f32 %v47_v27  ;;  %vm56_vm4 = vmor %vm54_vm3, %vm55_vm2  ;;  %vm64_vm7 = vweird.f32 %v47_v27 }
  0x86   :  { %v50_v29 = vmul.f32 %v440_v26, %v49_v28 }
  0x88   :  { %v51_v30 = vmul.f32 0.5, %v50_v29 }
  0x8a   :  { %v52_v31 = vsub.f32 1.5, %v51_v30 }
  0x8b   :  { %v442_v32 = vpop.eup %441 }
  0x8c   :  { %v53_v33 = vmul.f32 %v440_v26, %v52_v31  ;;  %v59_v34 = vmul.f32 %v442_v32, %v47_v27  ;;  %vm65_vm6 = vweird.f32 %v442_v32  ;;  %v228_v31 = vld [vmem:[#allocation3] sm:$0xff] }
  0x8d   :  { %vm66_vm8 = vmor %vm64_vm7, %vm65_vm6 }
  0x8e   :  { %v57_v36 = vsel %vm56_vm4, %v440_v26, %v53_v33  ;;  %v60_v37 = vmul.f32 %v442_v32, %v59_v34  ;;  %v229_v34 = vld [vmem:[#allocation3 + $0x8] sm:$0xff] }
  0x8f   :  { %v68_v38 = vmul.f32 %v57_v36, %v515_v0 }
  0x90   :  { %v61_v39 = vmul.f32 0.5, %v60_v37 }
  0x91   :  { %v74_v40 = vmul.f32 %v436_v35, %v68_v38 }
  0x92   :  { %v62_v41 = vsub.f32 1.5, %v61_v39 }
  0x93   :  { %v76_v42 = vpack.c.bf16 %v74_v40, %v74_v40 }
  0x94   :  { %v63_v43 = vmul.f32 %v442_v32, %v62_v41 }
  0x95   :  { %79 = vst.msk [vmem:[#allocation2] sm:$0xf] %vm78_vm5, %v76_v42 }
  0x96   :  { %v67_v44 = vsel %vm66_vm8, %v442_v32, %v63_v43 }
  0x97   :  { %v69_v45 = vmul.f32 %v67_v44, %v522_v2 }
  0x99   :  { %v75_v46 = vmul.f32 %v436_v35, %v69_v45 }
  0x9b   :  { %v77_v47 = vpack.c.bf16 %v75_v46, %v75_v46 }
  0x9d   :  { %80 = vst.msk [vmem:[#allocation2 + $0x4] sm:$0xf] %vm78_vm5, %v77_v47 }
  0xa4   :  { %v414_v48 = vld [vmem:[#allocation2] sm:$0xff] }
  0xa5   :  { %362 = vmatmul.msk.bf16.vlgmr.msra.gmra.mxu0 %vm30_vm0, %v414_v48  ;;  %379 = vmatmul.msk.bf16.vlgmr.msra.gmra.mxu1 %vm30_vm0, %v414_v48 }
 0x122   :  { %v135_v55 = vpop.f32.mrf.mxu0  ;;  %v181_v13 = vpop.f32.mrf.mxu1 }
 0x123   :  { %v380_v56 = vmul.f32 -1.442695, %v135_v55 }
 0x125   :  { %443 = vpow2.f32 %v380_v56 }
 0x12a   :  { %v137_v59 = vpop.f32.mrf.mxu0  ;;  %v183_v27 = vpop.f32.mrf.mxu1 }
 0x12b   :  { %v444_v60 = vpop.eup %443  ;;  %v381_v61 = vmul.f32 -1.442695, %v137_v59 }
 0x12c   :  { %v192_v62 = vadd.f32 1.0, %v444_v60 }
 0x12d   :  { %445 = vpow2.f32 %v381_v61 }
 0x12e   :  { %447 = vrcp.f32 %v192_v62  ;;  %v205_v10 = vand.u32 2147483648, %v192_v62  ;;  %vm199_vm10 = vweird.f32 %v192_v62  ;;  %v203_v11 = vand.u32 2147483647, %v192_v62 }
 0x130   :  { %v206_v16 = vor.u32 1.1754944e-38, %v205_v10  ;;  %vm204_vm12 = vcmp.eq.f32.partialorder %v203_v11, 8.507059e+37 }
 0x133   :  { %v446_v1 = vpop.eup %445 }
 0x134   :  { %v448_v3 = vpop.eup %447  ;;  %v193_v4 = vadd.f32 1.0, %v446_v1 }
 0x135   :  { %v195_v5 = vmul.f32 %v448_v3, %v192_v62  ;;  %vm200_vm9 = vweird.f32 %v448_v3 }
 0x136   :  { %449 = vrcp.f32 %v193_v4  ;;  %vm201_vm11 = vmor %vm199_vm10, %vm200_vm9  ;;  %v220_v17 = vand.u32 2147483648, %v193_v4  ;;  %v218_v19 = vand.u32 2147483647, %v193_v4  ;;  %vm214_vm14 = vweird.f32 %v193_v4 }
 0x137   :  { %v196_v6 = vsub.f32 1.0, %v195_v5 }
 0x138   :  { %v221_v22 = vor.u32 1.1754944e-38, %v220_v17  ;;  %vm219_vm1 = vcmp.eq.f32.partialorder %v218_v19, 8.507059e+37 }
 0x139   :  { %v197_v7 = vmul.f32 %v448_v3, %v196_v6 }
 0x13b   :  { %v198_v8 = vadd.f32 %v448_v3, %v197_v7 }
 0x13c   :  { %v450_v9 = vpop.eup %449 }
 0x13d   :  { %v210_v12 = vmul.f32 %v450_v9, %v193_v4  ;;  %v202_v14 = vsel %vm201_vm11, %v448_v3, %v198_v8  ;;  %vm215_vm13 = vweird.f32 %v450_v9 }
 0x13e   :  { %v207_v20 = vsel %vm204_vm12, %v206_v16, %v202_v14  ;;  %vm216_vm15 = vmor %vm214_vm14, %vm215_vm13 }
 0x13f   :  { %v211_v15 = vsub.f32 1.0, %v210_v12  ;;  %v224_v23 = vmul.f32 %v207_v20, %v135_v55 }
 0x141   :  { %v212_v18 = vmul.f32 %v450_v9, %v211_v15  ;;  %v226_v28 = vmul.f32 %v224_v23, %v181_v13 }
 0x143   :  { %v213_v21 = vadd.f32 %v450_v9, %v212_v18 }
 0x145   :  { %v217_v24 = vsel %vm216_vm15, %v450_v9, %v213_v21 }
 0x146   :  { %v222_v25 = vsel %vm219_vm1, %v221_v22, %v217_v24 }
 0x147   :  { %v225_v26 = vmul.f32 %v222_v25, %v137_v59 }
 0x149   :  { %v227_v29 = vmul.f32 %v225_v26, %v183_v27 }
 0x14b   :  { %v230_v30 = vpack.c.bf16 %v227_v29, %v226_v28 }
 0x14d   :  { %303 = vmatmul.bf16.vlgmr.msra.gmra.mxu2 %v230_v30 }
 0x1d0   :  { %v304_v32 = vpop.f32.mrf.mxu2 }
 0x1d1   :  { %v309_v33 = vadd.f32 %v304_v32, %v228_v31 }
 0x1d3   :  { %311 = vst.msk [vmem:[#allocation3] sm:$0xff] %vm30_vm0, %v309_v33 }
 0x1d8   :  { %v306_v35 = vpop.f32.mrf.mxu2 }
 0x1d9   :  { %v310_v36 = vadd.f32 %v306_v35, %v229_v34 }
 0x1da   :  { %v316_v37 = vld [vmem:[#allocation3] sm:$0xff] }
 0x1db   :  { %312 = vst.msk [vmem:[#allocation3 + $0x8] sm:$0xff] %vm30_vm0, %v310_v36  ;;  %v320_v38 = vadd.f32 %v316_v37, %v515_v0 }
 0x1dd   :  { %322 = vst.msk [vmem:[#allocation4] sm:$0xff] %vm30_vm0, %v320_v38 }
 0x1e2   :  { %v317_v39 = vld [vmem:[#allocation3 + $0x8] sm:$0xff] }
 0x1e3   :  { %v321_v40 = vadd.f32 %v317_v39, %v522_v2 }
 0x1e5   :  { %323 = vst.msk [vmem:[#allocation4 + $0x8] sm:$0xff] %vm30_vm0, %v321_v40 }
 0x1e6   :  { %336 = dma.vmem_to_hbm [thread:$0]  %s329_s26, 256, %s331_s29, [#allocation5], %s480_s30, %s480_s30, %s481_s6  }
 0x1e7   :  { %475 = dma.done.wait [#allocation5], 256  }
 0x1e8   :  { %476 = vsyncadd [#allocation5], 4294967040 }
 0x1e9   :  { %341 = vsyncpa [#allocation5], 1 }

</bundles_post_ra>
